<compile_context>
chip_gen: v7x
topology: tpu7x:2x2x1
jax: 0.10.0
libtpu: 0.0.40
codegen_flags: <defaults>
</compile_context>

<pallas_src>
import jax
import jax.numpy as jnp
from jax import lax
from jax.experimental import pallas as pl
from jax.experimental.pallas import tpu as pltpu

_LANE = 128      # lane width  (last-dim tiling)
_SUBLANE = 8     # sublane width (2nd-to-last-dim tiling)
_T_CHUNK = 8     # LSTM time steps per grid iteration


def _round_up(x: int, m: int) -> int:
    return (x + m - 1) // m * m


# ----------------------------------------------------------------------------
# Pallas kernel: T_CHUNK LSTM steps per grid iteration; h/c carried in VMEM
# scratch across grid iterations. Gate order follows PyTorch nn.LSTM
# [i, f, g, o]; each gate is padded to its own Hp-wide lane-aligned slot.
# ----------------------------------------------------------------------------
def _lstm_chunk_kernel(gx_ref, whh_ref, o_ref, h_sc, c_sc):
    @pl.when(pl.program_id(0) == 0)
    def _():
        # get_initial_hidden(): zero h0 / c0
        h_sc[...] = jnp.zeros_like(h_sc)
        c_sc[...] = jnp.zeros_like(c_sc)

    hp = h_sc.shape[-1]
    n_steps = gx_ref.shape[0]

    def _sigmoid(x):
        # sigmoid(x) == 0.5 * (1 + tanh(0.5 * x)): one EUP op instead of two.
        return 0.5 * jnp.tanh(0.5 * x) + 0.5

    def step(s, carry):
        h_prev = h_sc[...]                                   # (Bp, Hp)
        c_prev = c_sc[...]                                   # (Bp, Hp)
        # Only the recurrent matmul remains on the serial critical path; the
        # x-projection gx was precomputed time-parallel outside the kernel.
        gates = gx_ref[s] + jnp.dot(
            h_prev, whh_ref[...], preferred_element_type=jnp.float32)  # (Bp, 4Hp)

        i_g = _sigmoid(gates[:, 0 * hp:1 * hp])
        f_g = _sigmoid(gates[:, 1 * hp:2 * hp])
        g_g = jnp.tanh(gates[:, 2 * hp:3 * hp])
        o_g = _sigmoid(gates[:, 3 * hp:4 * hp])

        c_new = f_g * c_prev + i_g * g_g
        h_new = o_g * jnp.tanh(c_new)

        c_sc[...] = c_new
        h_sc[...] = h_new
        o_ref[s] = h_new.astype(o_ref.dtype)
        return carry

    lax.fori_loop(0, n_steps, step, 0, unroll=True)


def _lstm_pallas(gx, whh_t, t_chunk):
    """gx: (Sp, Bp, 4*Hp) f32; whh_t: (Hp, 4*Hp) f32 -> (Sp, Bp, Hp) f32."""
    Sp, Bp, G = gx.shape
    Hp = G // 4

    return pl.pallas_call(
        _lstm_chunk_kernel,
        out_shape=jax.ShapeDtypeStruct((Sp, Bp, Hp), jnp.float32),
        grid_spec=pltpu.PrefetchScalarGridSpec(
            num_scalar_prefetch=0,
            grid=(Sp // t_chunk,),
            in_specs=[
                # Chunk of precomputed input-gate pre-activations.
                pl.BlockSpec((t_chunk, Bp, 4 * Hp), lambda t: (t, 0, 0)),
                # Recurrent weight, VMEM-resident (constant block index).
                pl.BlockSpec((Hp, 4 * Hp), lambda t: (0, 0)),
            ],
            out_specs=pl.BlockSpec((t_chunk, Bp, Hp), lambda t: (t, 0, 0)),
            scratch_shapes=[
                pltpu.VMEM((Bp, Hp), jnp.float32),   # h carry
                pltpu.VMEM((Bp, Hp), jnp.float32),   # c carry
            ],
        ),
        compiler_params=pltpu.CompilerParams(
            dimension_semantics=("arbitrary",),      # sequential time recurrence
        ),
    )(gx, whh_t)


# ----------------------------------------------------------------------------
# Module wrapper: embedding lookup, hoisted input projection, lane-dense
# padding, and the final batch-first transpose are plain-JAX glue.
# ----------------------------------------------------------------------------
@jax.jit
def lstm2seq_encoder_forward(tokens, emb_table, w_ih, w_hh):
    """
    tokens:    (B, S) int32 token ids
    emb_table: (V, E) float32 embedding matrix (the `embedder`)
    w_ih:      (4H, E) float32  (PyTorch weight_ih_l0)
    w_hh:      (4H, H) float32  (PyTorch weight_hh_l0)
    returns    (B, S, H) float32 encoding
    """
    B, S = tokens.shape
    H = w_hh.shape[1]
    Hp = _round_up(H, _LANE)
    Bp = _round_up(B, _SUBLANE)
    Sp = _round_up(S, _T_CHUNK)

    # embedder + emb_dropout(p=0): gather embeddings directly time-major.
    emb = jnp.take(emb_table, tokens.T, axis=0).astype(jnp.float32)     # (S, B, E)

    # Hoisted time-parallel input projection (one big MXU matmul):
    # gx[s, b, :] = emb[s, b, :] @ W_ih^T          (rnn_bias=False -> no bias)
    gx = jnp.einsum('sbe,ge->sbg', emb, w_ih.astype(jnp.float32))       # (S, B, 4H)

    # Lane-dense padding: each gate gets its own Hp-wide lane-aligned slot;
    # padded pre-activations are 0, so padded lanes of h/c stay 0.
    gx = gx.reshape(S, B, 4, H)
    gx = jnp.pad(gx, ((0, Sp - S), (0, Bp - B), (0, 0), (0, Hp - H)))
    gx = gx.reshape(Sp, Bp, 4 * Hp)

    # W_hh^T padded the same way; padded h lanes get zero weight rows.
    whh_t = w_hh.T.astype(jnp.float32).reshape(H, 4, H)
    whh_t = jnp.pad(whh_t, ((0, Hp - H), (0, 0), (0, Hp - H)))
    whh_t = whh_t.reshape(Hp, 4 * Hp)

    out = _lstm_pallas(gx, whh_t, _T_CHUNK)                             # (Sp, Bp, Hp)

    # Unidirectional, output_dropout(p=0): encoding == hidden-state sequence.
    # TODO(synk): bidirectional / num_layers>1 / dropout>0 ctor options (non-
    # default in the spec) are not implemented.
    return jnp.transpose(out[:S, :B, :H], (1, 0, 2))                    # (B, S, H)


# ----------------------------------------------------------------------------
# Pure-JAX reference (lax.scan) for correctness check of the kernel.
# ----------------------------------------------------------------------------
def _reference_forward(tokens, emb_table, w_ih, w_hh):
    emb = jnp.take(emb_table, tokens, axis=0).astype(jnp.float32)       # (B, S, E)
    B, S, E = emb.shape
    H = w_hh.shape[1]

    def step(carry, x_t):
        h, c = carry
        gates = x_t @ w_ih.T + h @ w_hh.T
        i = jax.nn.sigmoid(gates[:, 0 * H:1 * H])
        f = jax.nn.sigmoid(gates[:, 1 * H:2 * H])
        g = jnp.tanh(gates[:, 2 * H:3 * H])
        o = jax.nn.sigmoid(gates[:, 3 * H:4 * H])
        c = f * c + i * g
        h = o * jnp.tanh(c)
        return (h, c), h

    h0 = jnp.zeros((B, H), jnp.float32)
    c0 = jnp.zeros((B, H), jnp.float32)
    _, hs = lax.scan(step, (h0, c0), jnp.transpose(emb, (1, 0, 2)))
    return jnp.transpose(hs, (1, 0, 2))


if __name__ == "__main__":
    # Small shapes consistent with the module's forward (exercise B/S/H
    # padding and multiple time chunks).
    B, S = 6, 13         # batch, seq_length
    V = 50               # vocab for the synthetic embedder
    E = 32               # emb_dim
    H = 32               # hidden_dim

    key = jax.random.PRNGKey(0)
    k_tok, k_emb, k_ih, k_hh = jax.random.split(key, 4)

    tokens = jax.random.randint(k_tok, (B, S), 0, V, dtype=jnp.int32)
    emb_table = jax.random.normal(k_emb, (V, E), dtype=jnp.float32)

    # PyTorch nn.LSTM init: U(-1/sqrt(H), 1/sqrt(H)); rnn_bias=False -> no bias.
    bound = 1.0 / jnp.sqrt(jnp.float32(H))
    w_ih = jax.random.uniform(k_ih, (4 * H, E), jnp.float32, -bound, bound)
    w_hh = jax.random.uniform(k_hh, (4 * H, H), jnp.float32, -bound, bound)

    enc = lstm2seq_encoder_forward(tokens, emb_table, w_ih, w_hh)
    enc = jax.block_until_ready(enc)
    assert enc.shape == (B, S, H), enc.shape

    ref = _reference_forward(tokens, emb_table, w_ih, w_hh)
    assert jnp.allclose(enc, ref, atol=1e-4, rtol=1e-4), (
        float(jnp.max(jnp.abs(enc - ref))))

    print("KERNEL_OK")
</pallas_src>

<mosaic_0001>
module attributes {stable_mosaic.version = 11 : i64} {
  func.func @_lstm_chunk_kernel(%arg0: i32, %arg1: memref<8x8x512xf32, #tpu.memory_space<vmem>>, %arg2: memref<128x512xf32, #tpu.memory_space<vmem>>, %arg3: memref<8x8x128xf32, #tpu.memory_space<vmem>>, %arg4: memref<8x128xf32, #tpu.memory_space<vmem>>, %arg5: memref<8x128xf32, #tpu.memory_space<vmem>>) attributes {dimension_semantics = [#tpu.dimension_semantics<arbitrary>], iteration_bounds = array<i64: 2>, scalar_prefetch = 0 : i64, scratch_operands = 2 : i64, tpu.core_type = #tpu.core_type<tc>, window_params = [{transform_indices = @transform_0, window_bounds = array<i64: 8, 8, 512>}, {pipeline_mode = #tpu.pipeline_mode<synchronous>, transform_indices = @transform_1, window_bounds = array<i64: 128, 512>}, {transform_indices = @transform_2, window_bounds = array<i64: 8, 8, 128>}]} {
    %c0_i32 = arith.constant 0 : i32
    %0 = arith.cmpi eq, %arg0, %c0_i32 : i32
    %1 = arith.extui %0 : i1 to i32
    %c0_i32_0 = arith.constant 0 : i32
    %2 = arith.cmpi ne, %1, %c0_i32_0 : i32
    scf.if %2 {
      %cst_192 = arith.constant 0.000000e+00 : f32
      %363 = vector.broadcast %cst_192 : f32 to vector<8x128xf32>
      %c0_193 = arith.constant 0 : index
      %c0_194 = arith.constant 0 : index
      %364 = vector.load %arg4[%c0_193, %c0_194] : memref<8x128xf32, #tpu.memory_space<vmem>>, vector<8x128xf32>
      tpu.vector_store %arg4[%c0_193, %c0_194], %363 {strides = array<i32>} : memref<8x128xf32, #tpu.memory_space<vmem>>, vector<8x128xf32>,
      %cst_195 = arith.constant 0.000000e+00 : f32
      %365 = vector.broadcast %cst_195 : f32 to vector<8x128xf32>
      %c0_196 = arith.constant 0 : index
      %c0_197 = arith.constant 0 : index
      %366 = vector.load %arg5[%c0_196, %c0_197] : memref<8x128xf32, #tpu.memory_space<vmem>>, vector<8x128xf32>
      tpu.vector_store %arg5[%c0_196, %c0_197], %365 {strides = array<i32>} : memref<8x128xf32, #tpu.memory_space<vmem>>, vector<8x128xf32>,
    } else {
    }
    %c0_i32_1 = arith.constant 0 : i32
    %c0 = arith.constant 0 : index
    %c0_2 = arith.constant 0 : index
    %3 = vector.load %arg4[%c0, %c0_2] : memref<8x128xf32, #tpu.memory_space<vmem>>, vector<8x128xf32>
    %c0_3 = arith.constant 0 : index
    %c0_4 = arith.constant 0 : index
    %4 = vector.load %arg5[%c0_3, %c0_4] : memref<8x128xf32, #tpu.memory_space<vmem>>, vector<8x128xf32>
    %5 = arith.index_cast %c0_i32_1 : i32 to index
    %c0_5 = arith.constant 0 : index
    %c0_6 = arith.constant 0 : index
    %6 = vector.load %arg1[%5, %c0_5, %c0_6] : memref<8x8x512xf32, #tpu.memory_space<vmem>>, vector<1x8x512xf32>
    %7 = vector.shape_cast %6 : vector<1x8x512xf32> to vector<8x512xf32>
    %c0_7 = arith.constant 0 : index
    %c0_8 = arith.constant 0 : index
    %8 = vector.load %arg2[%c0_7, %c0_8] : memref<128x512xf32, #tpu.memory_space<vmem>>, vector<128x512xf32>
    %cst = arith.constant dense<0.000000e+00> : vector<8x512xf32>
    %9 = tpu.matmul %3, %8, %cst {dimension_numbers = #tpu.dot_dimension_numbers<[1], [0], [0], [1], [0, 0, 1, 1], [], []>} : vector<8x128xf32>, vector<128x512xf32>, vector<8x512xf32> -> vector<8x512xf32>
    %10 = arith.addf %7, %9 : vector<8x512xf32>
    %11 = vector.extract_strided_slice %10 {offsets = [0, 0], sizes = [8, 128], strides = [1, 1]} : vector<8x512xf32> to vector<8x128xf32>
    %cst_9 = arith.constant 5.000000e-01 : f32
    %12 = vector.broadcast %cst_9 : f32 to vector<8x128xf32>
    %13 = arith.mulf %12, %11 : vector<8x128xf32>
    %14 = math.tanh %13 : vector<8x128xf32>
    %cst_10 = arith.constant 5.000000e-01 : f32
    %15 = vector.broadcast %cst_10 : f32 to vector<8x128xf32>
    %16 = arith.mulf %15, %14 : vector<8x128xf32>
    %cst_11 = arith.constant 5.000000e-01 : f32
    %17 = vector.broadcast %cst_11 : f32 to vector<8x128xf32>
    %18 = arith.addf %16, %17 : vector<8x128xf32>
    %19 = vector.extract_strided_slice %10 {offsets = [0, 128], sizes = [8, 128], strides = [1, 1]} : vector<8x512xf32> to vector<8x128xf32>
    %cst_12 = arith.constant 5.000000e-01 : f32
    %20 = vector.broadcast %cst_12 : f32 to vector<8x128xf32>
    %21 = arith.mulf %20, %19 : vector<8x128xf32>
    %22 = math.tanh %21 : vector<8x128xf32>
    %cst_13 = arith.constant 5.000000e-01 : f32
    %23 = vector.broadcast %cst_13 : f32 to vector<8x128xf32>
    %24 = arith.mulf %23, %22 : vector<8x128xf32>
    %cst_14 = arith.constant 5.000000e-01 : f32
    %25 = vector.broadcast %cst_14 : f32 to vector<8x128xf32>
    %26 = arith.addf %24, %25 : vector<8x128xf32>
    %27 = vector.extract_strided_slice %10 {offsets = [0, 256], sizes = [8, 128], strides = [1, 1]} : vector<8x512xf32> to vector<8x128xf32>
    %28 = math.tanh %27 : vector<8x128xf32>
    %29 = vector.extract_strided_slice %10 {offsets = [0, 384], sizes = [8, 128], strides = [1, 1]} : vector<8x512xf32> to vector<8x128xf32>
    %cst_15 = arith.constant 5.000000e-01 : f32
    %30 = vector.broadcast %cst_15 : f32 to vector<8x128xf32>
    %31 = arith.mulf %30, %29 : vector<8x128xf32>
    %32 = math.tanh %31 : vector<8x128xf32>
    %cst_16 = arith.constant 5.000000e-01 : f32
    %33 = vector.broadcast %cst_16 : f32 to vector<8x128xf32>
    %34 = arith.mulf %33, %32 : vector<8x128xf32>
    %cst_17 = arith.constant 5.000000e-01 : f32
    %35 = vector.broadcast %cst_17 : f32 to vector<8x128xf32>
    %36 = arith.addf %34, %35 : vector<8x128xf32>
    %37 = arith.mulf %26, %4 : vector<8x128xf32>
    %38 = arith.mulf %18, %28 : vector<8x128xf32>
    %39 = arith.addf %37, %38 : vector<8x128xf32>
    %40 = math.tanh %39 : vector<8x128xf32>
    %41 = arith.mulf %36, %40 : vector<8x128xf32>
    %c0_18 = arith.constant 0 : index
    %c0_19 = arith.constant 0 : index
    %42 = vector.load %arg5[%c0_18, %c0_19] : memref<8x128xf32, #tpu.memory_space<vmem>>, vector<8x128xf32>
    tpu.vector_store %arg5[%c0_18, %c0_19], %39 {strides = array<i32>} : memref<8x128xf32, #tpu.memory_space<vmem>>, vector<8x128xf32>,
    %c0_20 = arith.constant 0 : index
    %c0_21 = arith.constant 0 : index
    %43 = vector.load %arg4[%c0_20, %c0_21] : memref<8x128xf32, #tpu.memory_space<vmem>>, vector<8x128xf32>
    tpu.vector_store %arg4[%c0_20, %c0_21], %41 {strides = array<i32>} : memref<8x128xf32, #tpu.memory_space<vmem>>, vector<8x128xf32>,
    %44 = arith.index_cast %c0_i32_1 : i32 to index
    %c0_22 = arith.constant 0 : index
    %c0_23 = arith.constant 0 : index
    %45 = vector.load %arg3[%44, %c0_22, %c0_23] : memref<8x8x128xf32, #tpu.memory_space<vmem>>, vector<1x8x128xf32>
    %46 = vector.shape_cast %45 : vector<1x8x128xf32> to vector<8x128xf32>
    %47 = vector.shape_cast %41 : vector<8x128xf32> to vector<1x8x128xf32>
    tpu.vector_store %arg3[%44, %c0_22, %c0_23], %47 {strides = array<i32>} : memref<8x8x128xf32, #tpu.memory_space<vmem>>, vector<1x8x128xf32>,
    %c1_i32 = arith.constant 1 : i32
    %c0_24 = arith.constant 0 : index
    %c0_25 = arith.constant 0 : index
    %48 = vector.load %arg4[%c0_24, %c0_25] : memref<8x128xf32, #tpu.memory_space<vmem>>, vector<8x128xf32>
    %c0_26 = arith.constant 0 : index
    %c0_27 = arith.constant 0 : index
    %49 = vector.load %arg5[%c0_26, %c0_27] : memref<8x128xf32, #tpu.memory_space<vmem>>, vector<8x128xf32>
    %50 = arith.index_cast %c1_i32 : i32 to index
    %c0_28 = arith.constant 0 : index
    %c0_29 = arith.constant 0 : index
    %51 = vector.load %arg1[%50, %c0_28, %c0_29] : memref<8x8x512xf32, #tpu.memory_space<vmem>>, vector<1x8x512xf32>
    %52 = vector.shape_cast %51 : vector<1x8x512xf32> to vector<8x512xf32>
    %c0_30 = arith.constant 0 : index
    %c0_31 = arith.constant 0 : index
    %53 = vector.load %arg2[%c0_30, %c0_31] : memref<128x512xf32, #tpu.memory_space<vmem>>, vector<128x512xf32>
    %cst_32 = arith.constant dense<0.000000e+00> : vector<8x512xf32>
    %54 = tpu.matmul %48, %53, %cst_32 {dimension_numbers = #tpu.dot_dimension_numbers<[1], [0], [0], [1], [0, 0, 1, 1], [], []>} : vector<8x128xf32>, vector<128x512xf32>, vector<8x512xf32> -> vector<8x512xf32>
    %55 = arith.addf %52, %54 : vector<8x512xf32>
    %56 = vector.extract_strided_slice %55 {offsets = [0, 0], sizes = [8, 128], strides = [1, 1]} : vector<8x512xf32> to vector<8x128xf32>
    %cst_33 = arith.constant 5.000000e-01 : f32
    %57 = vector.broadcast %cst_33 : f32 to vector<8x128xf32>
    %58 = arith.mulf %57, %56 : vector<8x128xf32>
    %59 = math.tanh %58 : vector<8x128xf32>
    %cst_34 = arith.constant 5.000000e-01 : f32
    %60 = vector.broadcast %cst_34 : f32 to vector<8x128xf32>
    %61 = arith.mulf %60, %59 : vector<8x128xf32>
    %cst_35 = arith.constant 5.000000e-01 : f32
    %62 = vector.broadcast %cst_35 : f32 to vector<8x128xf32>
    %63 = arith.addf %61, %62 : vector<8x128xf32>
    %64 = vector.extract_strided_slice %55 {offsets = [0, 128], sizes = [8, 128], strides = [1, 1]} : vector<8x512xf32> to vector<8x128xf32>
    %cst_36 = arith.constant 5.000000e-01 : f32
    %65 = vector.broadcast %cst_36 : f32 to vector<8x128xf32>
    %66 = arith.mulf %65, %64 : vector<8x128xf32>
    %67 = math.tanh %66 : vector<8x128xf32>
    %cst_37 = arith.constant 5.000000e-01 : f32
    %68 = vector.broadcast %cst_37 : f32 to vector<8x128xf32>
    %69 = arith.mulf %68, %67 : vector<8x128xf32>
    %cst_38 = arith.constant 5.000000e-01 : f32
    %70 = vector.broadcast %cst_38 : f32 to vector<8x128xf32>
    %71 = arith.addf %69, %70 : vector<8x128xf32>
    %72 = vector.extract_strided_slice %55 {offsets = [0, 256], sizes = [8, 128], strides = [1, 1]} : vector<8x512xf32> to vector<8x128xf32>
    %73 = math.tanh %72 : vector<8x128xf32>
    %74 = vector.extract_strided_slice %55 {offsets = [0, 384], sizes = [8, 128], strides = [1, 1]} : vector<8x512xf32> to vector<8x128xf32>
    %cst_39 = arith.constant 5.000000e-01 : f32
    %75 = vector.broadcast %cst_39 : f32 to vector<8x128xf32>
    %76 = arith.mulf %75, %74 : vector<8x128xf32>
    %77 = math.tanh %76 : vector<8x128xf32>
    %cst_40 = arith.constant 5.000000e-01 : f32
    %78 = vector.broadcast %cst_40 : f32 to vector<8x128xf32>
    %79 = arith.mulf %78, %77 : vector<8x128xf32>
    %cst_41 = arith.constant 5.000000e-01 : f32
    %80 = vector.broadcast %cst_41 : f32 to vector<8x128xf32>
    %81 = arith.addf %79, %80 : vector<8x128xf32>
    %82 = arith.mulf %71, %49 : vector<8x128xf32>
    %83 = arith.mulf %63, %73 : vector<8x128xf32>
    %84 = arith.addf %82, %83 : vector<8x128xf32>
    %85 = math.tanh %84 : vector<8x128xf32>
    %86 = arith.mulf %81, %85 : vector<8x128xf32>
    %c0_42 = arith.constant 0 : index
    %c0_43 = arith.constant 0 : index
    %87 = vector.load %arg5[%c0_42, %c0_43] : memref<8x128xf32, #tpu.memory_space<vmem>>, vector<8x128xf32>
    tpu.vector_store %arg5[%c0_42, %c0_43], %84 {strides = array<i32>} : memref<8x128xf32, #tpu.memory_space<vmem>>, vector<8x128xf32>,
    %c0_44 = arith.constant 0 : index
    %c0_45 = arith.constant 0 : index
    %88 = vector.load %arg4[%c0_44, %c0_45] : memref<8x128xf32, #tpu.memory_space<vmem>>, vector<8x128xf32>
    tpu.vector_store %arg4[%c0_44, %c0_45], %86 {strides = array<i32>} : memref<8x128xf32, #tpu.memory_space<vmem>>, vector<8x128xf32>,
    %89 = arith.index_cast %c1_i32 : i32 to index
    %c0_46 = arith.constant 0 : index
    %c0_47 = arith.constant 0 : index
    %90 = vector.load %arg3[%89, %c0_46, %c0_47] : memref<8x8x128xf32, #tpu.memory_space<vmem>>, vector<1x8x128xf32>
    %91 = vector.shape_cast %90 : vector<1x8x128xf32> to vector<8x128xf32>
    %92 = vector.shape_cast %86 : vector<8x128xf32> to vector<1x8x128xf32>
    tpu.vector_store %arg3[%89, %c0_46, %c0_47], %92 {strides = array<i32>} : memref<8x8x128xf32, #tpu.memory_space<vmem>>, vector<1x8x128xf32>,
    %c2_i32 = arith.constant 2 : i32
    %c0_48 = arith.constant 0 : index
    %c0_49 = arith.constant 0 : index
    %93 = vector.load %arg4[%c0_48, %c0_49] : memref<8x128xf32, #tpu.memory_space<vmem>>, vector<8x128xf32>
    %c0_50 = arith.constant 0 : index
    %c0_51 = arith.constant 0 : index
    %94 = vector.load %arg5[%c0_50, %c0_51] : memref<8x128xf32, #tpu.memory_space<vmem>>, vector<8x128xf32>
    %95 = arith.index_cast %c2_i32 : i32 to index
    %c0_52 = arith.constant 0 : index
    %c0_53 = arith.constant 0 : index
    %96 = vector.load %arg1[%95, %c0_52, %c0_53] : memref<8x8x512xf32, #tpu.memory_space<vmem>>, vector<1x8x512xf32>
    %97 = vector.shape_cast %96 : vector<1x8x512xf32> to vector<8x512xf32>
    %c0_54 = arith.constant 0 : index
    %c0_55 = arith.constant 0 : index
    %98 = vector.load %arg2[%c0_54, %c0_55] : memref<128x512xf32, #tpu.memory_space<vmem>>, vector<128x512xf32>
    %cst_56 = arith.constant dense<0.000000e+00> : vector<8x512xf32>
    %99 = tpu.matmul %93, %98, %cst_56 {dimension_numbers = #tpu.dot_dimension_numbers<[1], [0], [0], [1], [0, 0, 1, 1], [], []>} : vector<8x128xf32>, vector<128x512xf32>, vector<8x512xf32> -> vector<8x512xf32>
    %100 = arith.addf %97, %99 : vector<8x512xf32>
    %101 = vector.extract_strided_slice %100 {offsets = [0, 0], sizes = [8, 128], strides = [1, 1]} : vector<8x512xf32> to vector<8x128xf32>
    %cst_57 = arith.constant 5.000000e-01 : f32
    %102 = vector.broadcast %cst_57 : f32 to vector<8x128xf32>
    %103 = arith.mulf %102, %101 : vector<8x128xf32>
    %104 = math.tanh %103 : vector<8x128xf32>
    %cst_58 = arith.constant 5.000000e-01 : f32
    %105 = vector.broadcast %cst_58 : f32 to vector<8x128xf32>
    %106 = arith.mulf %105, %104 : vector<8x128xf32>
    %cst_59 = arith.constant 5.000000e-01 : f32
    %107 = vector.broadcast %cst_59 : f32 to vector<8x128xf32>
    %108 = arith.addf %106, %107 : vector<8x128xf32>
    %109 = vector.extract_strided_slice %100 {offsets = [0, 128], sizes = [8, 128], strides = [1, 1]} : vector<8x512xf32> to vector<8x128xf32>
    %cst_60 = arith.constant 5.000000e-01 : f32
    %110 = vector.broadcast %cst_60 : f32 to vector<8x128xf32>
    %111 = arith.mulf %110, %109 : vector<8x128xf32>
    %112 = math.tanh %111 : vector<8x128xf32>
    %cst_61 = arith.constant 5.000000e-01 : f32
    %113 = vector.broadcast %cst_61 : f32 to vector<8x128xf32>
    %114 = arith.mulf %113, %112 : vector<8x128xf32>
    %cst_62 = arith.constant 5.000000e-01 : f32
    %115 = vector.broadcast %cst_62 : f32 to vector<8x128xf32>
    %116 = arith.addf %114, %115 : vector<8x128xf32>
    %117 = vector.extract_strided_slice %100 {offsets = [0, 256], sizes = [8, 128], strides = [1, 1]} : vector<8x512xf32> to vector<8x128xf32>
    %118 = math.tanh %117 : vector<8x128xf32>
    %119 = vector.extract_strided_slice %100 {offsets = [0, 384], sizes = [8, 128], strides = [1, 1]} : vector<8x512xf32> to vector<8x128xf32>
    %cst_63 = arith.constant 5.000000e-01 : f32
    %120 = vector.broadcast %cst_63 : f32 to vector<8x128xf32>
    %121 = arith.mulf %120, %119 : vector<8x128xf32>
    %122 = math.tanh %121 : vector<8x128xf32>
    %cst_64 = arith.constant 5.000000e-01 : f32
    %123 = vector.broadcast %cst_64 : f32 to vector<8x128xf32>
    %124 = arith.mulf %123, %122 : vector<8x128xf32>
    %cst_65 = arith.constant 5.000000e-01 : f32
    %125 = vector.broadcast %cst_65 : f32 to vector<8x128xf32>
    %126 = arith.addf %124, %125 : vector<8x128xf32>
    %127 = arith.mulf %116, %94 : vector<8x128xf32>
    %128 = arith.mulf %108, %118 : vector<8x128xf32>
    %129 = arith.addf %127, %128 : vector<8x128xf32>
    %130 = math.tanh %129 : vector<8x128xf32>
    %131 = arith.mulf %126, %130 : vector<8x128xf32>
    %c0_66 = arith.constant 0 : index
    %c0_67 = arith.constant 0 : index
    %132 = vector.load %arg5[%c0_66, %c0_67] : memref<8x128xf32, #tpu.memory_space<vmem>>, vector<8x128xf32>
    tpu.vector_store %arg5[%c0_66, %c0_67], %129 {strides = array<i32>} : memref<8x128xf32, #tpu.memory_space<vmem>>, vector<8x128xf32>,
    %c0_68 = arith.constant 0 : index
    %c0_69 = arith.constant 0 : index
    %133 = vector.load %arg4[%c0_68, %c0_69] : memref<8x128xf32, #tpu.memory_space<vmem>>, vector<8x128xf32>
    tpu.vector_store %arg4[%c0_68, %c0_69], %131 {strides = array<i32>} : memref<8x128xf32, #tpu.memory_space<vmem>>, vector<8x128xf32>,
    %134 = arith.index_cast %c2_i32 : i32 to index
    %c0_70 = arith.constant 0 : index
    %c0_71 = arith.constant 0 : index
    %135 = vector.load %arg3[%134, %c0_70, %c0_71] : memref<8x8x128xf32, #tpu.memory_space<vmem>>, vector<1x8x128xf32>
    %136 = vector.shape_cast %135 : vector<1x8x128xf32> to vector<8x128xf32>
    %137 = vector.shape_cast %131 : vector<8x128xf32> to vector<1x8x128xf32>
    tpu.vector_store %arg3[%134, %c0_70, %c0_71], %137 {strides = array<i32>} : memref<8x8x128xf32, #tpu.memory_space<vmem>>, vector<1x8x128xf32>,
    %c3_i32 = arith.constant 3 : i32
    %c0_72 = arith.constant 0 : index
    %c0_73 = arith.constant 0 : index
    %138 = vector.load %arg4[%c0_72, %c0_73] : memref<8x128xf32, #tpu.memory_space<vmem>>, vector<8x128xf32>
    %c0_74 = arith.constant 0 : index
    %c0_75 = arith.constant 0 : index
    %139 = vector.load %arg5[%c0_74, %c0_75] : memref<8x128xf32, #tpu.memory_space<vmem>>, vector<8x128xf32>
    %140 = arith.index_cast %c3_i32 : i32 to index
    %c0_76 = arith.constant 0 : index
    %c0_77 = arith.constant 0 : index
    %141 = vector.load %arg1[%140, %c0_76, %c0_77] : memref<8x8x512xf32, #tpu.memory_space<vmem>>, vector<1x8x512xf32>
    %142 = vector.shape_cast %141 : vector<1x8x512xf32> to vector<8x512xf32>
    %c0_78 = arith.constant 0 : index
    %c0_79 = arith.constant 0 : index
    %143 = vector.load %arg2[%c0_78, %c0_79] : memref<128x512xf32, #tpu.memory_space<vmem>>, vector<128x512xf32>
    %cst_80 = arith.constant dense<0.000000e+00> : vector<8x512xf32>
    %144 = tpu.matmul %138, %143, %cst_80 {dimension_numbers = #tpu.dot_dimension_numbers<[1], [0], [0], [1], [0, 0, 1, 1], [], []>} : vector<8x128xf32>, vector<128x512xf32>, vector<8x512xf32> -> vector<8x512xf32>
    %145 = arith.addf %142, %144 : vector<8x512xf32>
    %146 = vector.extract_strided_slice %145 {offsets = [0, 0], sizes = [8, 128], strides = [1, 1]} : vector<8x512xf32> to vector<8x128xf32>
    %cst_81 = arith.constant 5.000000e-01 : f32
    %147 = vector.broadcast %cst_81 : f32 to vector<8x128xf32>
    %148 = arith.mulf %147, %146 : vector<8x128xf32>
    %149 = math.tanh %148 : vector<8x128xf32>
    %cst_82 = arith.constant 5.000000e-01 : f32
    %150 = vector.broadcast %cst_82 : f32 to vector<8x128xf32>
    %151 = arith.mulf %150, %149 : vector<8x128xf32>
    %cst_83 = arith.constant 5.000000e-01 : f32
    %152 = vector.broadcast %cst_83 : f32 to vector<8x128xf32>
    %153 = arith.addf %151, %152 : vector<8x128xf32>
    %154 = vector.extract_strided_slice %145 {offsets = [0, 128], sizes = [8, 128], strides = [1, 1]} : vector<8x512xf32> to vector<8x128xf32>
    %cst_84 = arith.constant 5.000000e-01 : f32
    %155 = vector.broadcast %cst_84 : f32 to vector<8x128xf32>
    %156 = arith.mulf %155, %154 : vector<8x128xf32>
    %157 = math.tanh %156 : vector<8x128xf32>
    %cst_85 = arith.constant 5.000000e-01 : f32
    %158 = vector.broadcast %cst_85 : f32 to vector<8x128xf32>
    %159 = arith.mulf %158, %157 : vector<8x128xf32>
    %cst_86 = arith.constant 5.000000e-01 : f32
    %160 = vector.broadcast %cst_86 : f32 to vector<8x128xf32>
    %161 = arith.addf %159, %160 : vector<8x128xf32>
    %162 = vector.extract_strided_slice %145 {offsets = [0, 256], sizes = [8, 128], strides = [1, 1]} : vector<8x512xf32> to vector<8x128xf32>
    %163 = math.tanh %162 : vector<8x128xf32>
    %164 = vector.extract_strided_slice %145 {offsets = [0, 384], sizes = [8, 128], strides = [1, 1]} : vector<8x512xf32> to vector<8x128xf32>
    %cst_87 = arith.constant 5.000000e-01 : f32
    %165 = vector.broadcast %cst_87 : f32 to vector<8x128xf32>
    %166 = arith.mulf %165, %164 : vector<8x128xf32>
    %167 = math.tanh %166 : vector<8x128xf32>
    %cst_88 = arith.constant 5.000000e-01 : f32
    %168 = vector.broadcast %cst_88 : f32 to vector<8x128xf32>
    %169 = arith.mulf %168, %167 : vector<8x128xf32>
    %cst_89 = arith.constant 5.000000e-01 : f32
    %170 = vector.broadcast %cst_89 : f32 to vector<8x128xf32>
    %171 = arith.addf %169, %170 : vector<8x128xf32>
    %172 = arith.mulf %161, %139 : vector<8x128xf32>
    %173 = arith.mulf %153, %163 : vector<8x128xf32>
    %174 = arith.addf %172, %173 : vector<8x128xf32>
    %175 = math.tanh %174 : vector<8x128xf32>
    %176 = arith.mulf %171, %175 : vector<8x128xf32>
    %c0_90 = arith.constant 0 : index
    %c0_91 = arith.constant 0 : index
    %177 = vector.load %arg5[%c0_90, %c0_91] : memref<8x128xf32, #tpu.memory_space<vmem>>, vector<8x128xf32>
    tpu.vector_store %arg5[%c0_90, %c0_91], %174 {strides = array<i32>} : memref<8x128xf32, #tpu.memory_space<vmem>>, vector<8x128xf32>,
    %c0_92 = arith.constant 0 : index
    %c0_93 = arith.constant 0 : index
    %178 = vector.load %arg4[%c0_92, %c0_93] : memref<8x128xf32, #tpu.memory_space<vmem>>, vector<8x128xf32>
    tpu.vector_store %arg4[%c0_92, %c0_93], %176 {strides = array<i32>} : memref<8x128xf32, #tpu.memory_space<vmem>>, vector<8x128xf32>,
    %179 = arith.index_cast %c3_i32 : i32 to index
    %c0_94 = arith.constant 0 : index
    %c0_95 = arith.constant 0 : index
    %180 = vector.load %arg3[%179, %c0_94, %c0_95] : memref<8x8x128xf32, #tpu.memory_space<vmem>>, vector<1x8x128xf32>
    %181 = vector.shape_cast %180 : vector<1x8x128xf32> to vector<8x128xf32>
    %182 = vector.shape_cast %176 : vector<8x128xf32> to vector<1x8x128xf32>
    tpu.vector_store %arg3[%179, %c0_94, %c0_95], %182 {strides = array<i32>} : memref<8x8x128xf32, #tpu.memory_space<vmem>>, vector<1x8x128xf32>,
    %c4_i32 = arith.constant 4 : i32
    %c0_96 = arith.constant 0 : index
    %c0_97 = arith.constant 0 : index
    %183 = vector.load %arg4[%c0_96, %c0_97] : memref<8x128xf32, #tpu.memory_space<vmem>>, vector<8x128xf32>
    %c0_98 = arith.constant 0 : index
    %c0_99 = arith.constant 0 : index
    %184 = vector.load %arg5[%c0_98, %c0_99] : memref<8x128xf32, #tpu.memory_space<vmem>>, vector<8x128xf32>
    %185 = arith.index_cast %c4_i32 : i32 to index
    %c0_100 = arith.constant 0 : index
    %c0_101 = arith.constant 0 : index
    %186 = vector.load %arg1[%185, %c0_100, %c0_101] : memref<8x8x512xf32, #tpu.memory_space<vmem>>, vector<1x8x512xf32>
    %187 = vector.shape_cast %186 : vector<1x8x512xf32> to vector<8x512xf32>
    %c0_102 = arith.constant 0 : index
    %c0_103 = arith.constant 0 : index
    %188 = vector.load %arg2[%c0_102, %c0_103] : memref<128x512xf32, #tpu.memory_space<vmem>>, vector<128x512xf32>
    %cst_104 = arith.constant dense<0.000000e+00> : vector<8x512xf32>
    %189 = tpu.matmul %183, %188, %cst_104 {dimension_numbers = #tpu.dot_dimension_numbers<[1], [0], [0], [1], [0, 0, 1, 1], [], []>} : vector<8x128xf32>, vector<128x512xf32>, vector<8x512xf32> -> vector<8x512xf32>
    %190 = arith.addf %187, %189 : vector<8x512xf32>
    %191 = vector.extract_strided_slice %190 {offsets = [0, 0], sizes = [8, 128], strides = [1, 1]} : vector<8x512xf32> to vector<8x128xf32>
    %cst_105 = arith.constant 5.000000e-01 : f32
    %192 = vector.broadcast %cst_105 : f32 to vector<8x128xf32>
    %193 = arith.mulf %192, %191 : vector<8x128xf32>
    %194 = math.tanh %193 : vector<8x128xf32>
    %cst_106 = arith.constant 5.000000e-01 : f32
    %195 = vector.broadcast %cst_106 : f32 to vector<8x128xf32>
    %196 = arith.mulf %195, %194 : vector<8x128xf32>
    %cst_107 = arith.constant 5.000000e-01 : f32
    %197 = vector.broadcast %cst_107 : f32 to vector<8x128xf32>
    %198 = arith.addf %196, %197 : vector<8x128xf32>
    %199 = vector.extract_strided_slice %190 {offsets = [0, 128], sizes = [8, 128], strides = [1, 1]} : vector<8x512xf32> to vector<8x128xf32>
    %cst_108 = arith.constant 5.000000e-01 : f32
    %200 = vector.broadcast %cst_108 : f32 to vector<8x128xf32>
    %201 = arith.mulf %200, %199 : vector<8x128xf32>
    %202 = math.tanh %201 : vector<8x128xf32>
    %cst_109 = arith.constant 5.000000e-01 : f32
    %203 = vector.broadcast %cst_109 : f32 to vector<8x128xf32>
    %204 = arith.mulf %203, %202 : vector<8x128xf32>
    %cst_110 = arith.constant 5.000000e-01 : f32
    %205 = vector.broadcast %cst_110 : f32 to vector<8x128xf32>
    %206 = arith.addf %204, %205 : vector<8x128xf32>
    %207 = vector.extract_strided_slice %190 {offsets = [0, 256], sizes = [8, 128], strides = [1, 1]} : vector<8x512xf32> to vector<8x128xf32>
    %208 = math.tanh %207 : vector<8x128xf32>
    %209 = vector.extract_strided_slice %190 {offsets = [0, 384], sizes = [8, 128], strides = [1, 1]} : vector<8x512xf32> to vector<8x128xf32>
    %cst_111 = arith.constant 5.000000e-01 : f32
    %210 = vector.broadcast %cst_111 : f32 to vector<8x128xf32>
    %211 = arith.mulf %210, %209 : vector<8x128xf32>
    %212 = math.tanh %211 : vector<8x128xf32>
    %cst_112 = arith.constant 5.000000e-01 : f32
    %213 = vector.broadcast %cst_112 : f32 to vector<8x128xf32>
    %214 = arith.mulf %213, %212 : vector<8x128xf32>
    %cst_113 = arith.constant 5.000000e-01 : f32
    %215 = vector.broadcast %cst_113 : f32 to vector<8x128xf32>
    %216 = arith.addf %214, %215 : vector<8x128xf32>
    %217 = arith.mulf %206, %184 : vector<8x128xf32>
    %218 = arith.mulf %198, %208 : vector<8x128xf32>
    %219 = arith.addf %217, %218 : vector<8x128xf32>
    %220 = math.tanh %219 : vector<8x128xf32>
    %221 = arith.mulf %216, %220 : vector<8x128xf32>
    %c0_114 = arith.constant 0 : index
    %c0_115 = arith.constant 0 : index
    %222 = vector.load %arg5[%c0_114, %c0_115] : memref<8x128xf32, #tpu.memory_space<vmem>>, vector<8x128xf32>
    tpu.vector_store %arg5[%c0_114, %c0_115], %219 {strides = array<i32>} : memref<8x128xf32, #tpu.memory_space<vmem>>, vector<8x128xf32>,
    %c0_116 = arith.constant 0 : index
    %c0_117 = arith.constant 0 : index
    %223 = vector.load %arg4[%c0_116, %c0_117] : memref<8x128xf32, #tpu.memory_space<vmem>>, vector<8x128xf32>
    tpu.vector_store %arg4[%c0_116, %c0_117], %221 {strides = array<i32>} : memref<8x128xf32, #tpu.memory_space<vmem>>, vector<8x128xf32>,
    %224 = arith.index_cast %c4_i32 : i32 to index
    %c0_118 = arith.constant 0 : index
    %c0_119 = arith.constant 0 : index
    %225 = vector.load %arg3[%224, %c0_118, %c0_119] : memref<8x8x128xf32, #tpu.memory_space<vmem>>, vector<1x8x128xf32>
    %226 = vector.shape_cast %225 : vector<1x8x128xf32> to vector<8x128xf32>
    %227 = vector.shape_cast %221 : vector<8x128xf32> to vector<1x8x128xf32>
    tpu.vector_store %arg3[%224, %c0_118, %c0_119], %227 {strides = array<i32>} : memref<8x8x128xf32, #tpu.memory_space<vmem>>, vector<1x8x128xf32>,
    %c5_i32 = arith.constant 5 : i32
    %c0_120 = arith.constant 0 : index
    %c0_121 = arith.constant 0 : index
    %228 = vector.load %arg4[%c0_120, %c0_121] : memref<8x128xf32, #tpu.memory_space<vmem>>, vector<8x128xf32>
    %c0_122 = arith.constant 0 : index
    %c0_123 = arith.constant 0 : index
    %229 = vector.load %arg5[%c0_122, %c0_123] : memref<8x128xf32, #tpu.memory_space<vmem>>, vector<8x128xf32>
    %230 = arith.index_cast %c5_i32 : i32 to index
    %c0_124 = arith.constant 0 : index
    %c0_125 = arith.constant 0 : index
    %231 = vector.load %arg1[%230, %c0_124, %c0_125] : memref<8x8x512xf32, #tpu.memory_space<vmem>>, vector<1x8x512xf32>
    %232 = vector.shape_cast %231 : vector<1x8x512xf32> to vector<8x512xf32>
    %c0_126 = arith.constant 0 : index
    %c0_127 = arith.constant 0 : index
    %233 = vector.load %arg2[%c0_126, %c0_127] : memref<128x512xf32, #tpu.memory_space<vmem>>, vector<128x512xf32>
    %cst_128 = arith.constant dense<0.000000e+00> : vector<8x512xf32>
    %234 = tpu.matmul %228, %233, %cst_128 {dimension_numbers = #tpu.dot_dimension_numbers<[1], [0], [0], [1], [0, 0, 1, 1], [], []>} : vector<8x128xf32>, vector<128x512xf32>, vector<8x512xf32> -> vector<8x512xf32>
    %235 = arith.addf %232, %234 : vector<8x512xf32>
    %236 = vector.extract_strided_slice %235 {offsets = [0, 0], sizes = [8, 128], strides = [1, 1]} : vector<8x512xf32> to vector<8x128xf32>
    %cst_129 = arith.constant 5.000000e-01 : f32
    %237 = vector.broadcast %cst_129 : f32 to vector<8x128xf32>
    %238 = arith.mulf %237, %236 : vector<8x128xf32>
    %239 = math.tanh %238 : vector<8x128xf32>
    %cst_130 = arith.constant 5.000000e-01 : f32
    %240 = vector.broadcast %cst_130 : f32 to vector<8x128xf32>
    %241 = arith.mulf %240, %239 : vector<8x128xf32>
    %cst_131 = arith.constant 5.000000e-01 : f32
    %242 = vector.broadcast %cst_131 : f32 to vector<8x128xf32>
    %243 = arith.addf %241, %242 : vector<8x128xf32>
    %244 = vector.extract_strided_slice %235 {offsets = [0, 128], sizes = [8, 128], strides = [1, 1]} : vector<8x512xf32> to vector<8x128xf32>
    %cst_132 = arith.constant 5.000000e-01 : f32
    %245 = vector.broadcast %cst_132 : f32 to vector<8x128xf32>
    %246 = arith.mulf %245, %244 : vector<8x128xf32>
    %247 = math.tanh %246 : vector<8x128xf32>
    %cst_133 = arith.constant 5.000000e-01 : f32
    %248 = vector.broadcast %cst_133 : f32 to vector<8x128xf32>
    %249 = arith.mulf %248, %247 : vector<8x128xf32>
    %cst_134 = arith.constant 5.000000e-01 : f32
    %250 = vector.broadcast %cst_134 : f32 to vector<8x128xf32>
    %251 = arith.addf %249, %250 : vector<8x128xf32>
    %252 = vector.extract_strided_slice %235 {offsets = [0, 256], sizes = [8, 128], strides = [1, 1]} : vector<8x512xf32> to vector<8x128xf32>
    %253 = math.tanh %252 : vector<8x128xf32>
    %254 = vector.extract_strided_slice %235 {offsets = [0, 384], sizes = [8, 128], strides = [1, 1]} : vector<8x512xf32> to vector<8x128xf32>
    %cst_135 = arith.constant 5.000000e-01 : f32
    %255 = vector.broadcast %cst_135 : f32 to vector<8x128xf32>
    %256 = arith.mulf %255, %254 : vector<8x128xf32>
    %257 = math.tanh %256 : vector<8x128xf32>
    %cst_136 = arith.constant 5.000000e-01 : f32
    %258 = vector.broadcast %cst_136 : f32 to vector<8x128xf32>
    %259 = arith.mulf %258, %257 : vector<8x128xf32>
    %cst_137 = arith.constant 5.000000e-01 : f32
    %260 = vector.broadcast %cst_137 : f32 to vector<8x128xf32>
    %261 = arith.addf %259, %260 : vector<8x128xf32>
    %262 = arith.mulf %251, %229 : vector<8x128xf32>
    %263 = arith.mulf %243, %253 : vector<8x128xf32>
    %264 = arith.addf %262, %263 : vector<8x128xf32>
    %265 = math.tanh %264 : vector<8x128xf32>
    %266 = arith.mulf %261, %265 : vector<8x128xf32>
    %c0_138 = arith.constant 0 : index
    %c0_139 = arith.constant 0 : index
    %267 = vector.load %arg5[%c0_138, %c0_139] : memref<8x128xf32, #tpu.memory_space<vmem>>, vector<8x128xf32>
    tpu.vector_store %arg5[%c0_138, %c0_139], %264 {strides = array<i32>} : memref<8x128xf32, #tpu.memory_space<vmem>>, vector<8x128xf32>,
    %c0_140 = arith.constant 0 : index
    %c0_141 = arith.constant 0 : index
    %268 = vector.load %arg4[%c0_140, %c0_141] : memref<8x128xf32, #tpu.memory_space<vmem>>, vector<8x128xf32>
    tpu.vector_store %arg4[%c0_140, %c0_141], %266 {strides = array<i32>} : memref<8x128xf32, #tpu.memory_space<vmem>>, vector<8x128xf32>,
    %269 = arith.index_cast %c5_i32 : i32 to index
    %c0_142 = arith.constant 0 : index
    %c0_143 = arith.constant 0 : index
    %270 = vector.load %arg3[%269, %c0_142, %c0_143] : memref<8x8x128xf32, #tpu.memory_space<vmem>>, vector<1x8x128xf32>
    %271 = vector.shape_cast %270 : vector<1x8x128xf32> to vector<8x128xf32>
    %272 = vector.shape_cast %266 : vector<8x128xf32> to vector<1x8x128xf32>
    tpu.vector_store %arg3[%269, %c0_142, %c0_143], %272 {strides = array<i32>} : memref<8x8x128xf32, #tpu.memory_space<vmem>>, vector<1x8x128xf32>,
    %c6_i32 = arith.constant 6 : i32
    %c0_144 = arith.constant 0 : index
    %c0_145 = arith.constant 0 : index
    %273 = vector.load %arg4[%c0_144, %c0_145] : memref<8x128xf32, #tpu.memory_space<vmem>>, vector<8x128xf32>
    %c0_146 = arith.constant 0 : index
    %c0_147 = arith.constant 0 : index
    %274 = vector.load %arg5[%c0_146, %c0_147] : memref<8x128xf32, #tpu.memory_space<vmem>>, vector<8x128xf32>
    %275 = arith.index_cast %c6_i32 : i32 to index
    %c0_148 = arith.constant 0 : index
    %c0_149 = arith.constant 0 : index
    %276 = vector.load %arg1[%275, %c0_148, %c0_149] : memref<8x8x512xf32, #tpu.memory_space<vmem>>, vector<1x8x512xf32>
    %277 = vector.shape_cast %276 : vector<1x8x512xf32> to vector<8x512xf32>
    %c0_150 = arith.constant 0 : index
    %c0_151 = arith.constant 0 : index
    %278 = vector.load %arg2[%c0_150, %c0_151] : memref<128x512xf32, #tpu.memory_space<vmem>>, vector<128x512xf32>
    %cst_152 = arith.constant dense<0.000000e+00> : vector<8x512xf32>
    %279 = tpu.matmul %273, %278, %cst_152 {dimension_numbers = #tpu.dot_dimension_numbers<[1], [0], [0], [1], [0, 0, 1, 1], [], []>} : vector<8x128xf32>, vector<128x512xf32>, vector<8x512xf32> -> vector<8x512xf32>
    %280 = arith.addf %277, %279 : vector<8x512xf32>
    %281 = vector.extract_strided_slice %280 {offsets = [0, 0], sizes = [8, 128], strides = [1, 1]} : vector<8x512xf32> to vector<8x128xf32>
    %cst_153 = arith.constant 5.000000e-01 : f32
    %282 = vector.broadcast %cst_153 : f32 to vector<8x128xf32>
    %283 = arith.mulf %282, %281 : vector<8x128xf32>
    %284 = math.tanh %283 : vector<8x128xf32>
    %cst_154 = arith.constant 5.000000e-01 : f32
    %285 = vector.broadcast %cst_154 : f32 to vector<8x128xf32>
    %286 = arith.mulf %285, %284 : vector<8x128xf32>
    %cst_155 = arith.constant 5.000000e-01 : f32
    %287 = vector.broadcast %cst_155 : f32 to vector<8x128xf32>
    %288 = arith.addf %286, %287 : vector<8x128xf32>
    %289 = vector.extract_strided_slice %280 {offsets = [0, 128], sizes = [8, 128], strides = [1, 1]} : vector<8x512xf32> to vector<8x128xf32>
    %cst_156 = arith.constant 5.000000e-01 : f32
    %290 = vector.broadcast %cst_156 : f32 to vector<8x128xf32>
    %291 = arith.mulf %290, %289 : vector<8x128xf32>
    %292 = math.tanh %291 : vector<8x128xf32>
    %cst_157 = arith.constant 5.000000e-01 : f32
    %293 = vector.broadcast %cst_157 : f32 to vector<8x128xf32>
    %294 = arith.mulf %293, %292 : vector<8x128xf32>
    %cst_158 = arith.constant 5.000000e-01 : f32
    %295 = vector.broadcast %cst_158 : f32 to vector<8x128xf32>
    %296 = arith.addf %294, %295 : vector<8x128xf32>
    %297 = vector.extract_strided_slice %280 {offsets = [0, 256], sizes = [8, 128], strides = [1, 1]} : vector<8x512xf32> to vector<8x128xf32>
    %298 = math.tanh %297 : vector<8x128xf32>
    %299 = vector.extract_strided_slice %280 {offsets = [0, 384], sizes = [8, 128], strides = [1, 1]} : vector<8x512xf32> to vector<8x128xf32>
    %cst_159 = arith.constant 5.000000e-01 : f32
    %300 = vector.broadcast %cst_159 : f32 to vector<8x128xf32>
    %301 = arith.mulf %300, %299 : vector<8x128xf32>
    %302 = math.tanh %301 : vector<8x128xf32>
    %cst_160 = arith.constant 5.000000e-01 : f32
    %303 = vector.broadcast %cst_160 : f32 to vector<8x128xf32>
    %304 = arith.mulf %303, %302 : vector<8x128xf32>
    %cst_161 = arith.constant 5.000000e-01 : f32
    %305 = vector.broadcast %cst_161 : f32 to vector<8x128xf32>
    %306 = arith.addf %304, %305 : vector<8x128xf32>
    %307 = arith.mulf %296, %274 : vector<8x128xf32>
    %308 = arith.mulf %288, %298 : vector<8x128xf32>
    %309 = arith.addf %307, %308 : vector<8x128xf32>
    %310 = math.tanh %309 : vector<8x128xf32>
    %311 = arith.mulf %306, %310 : vector<8x128xf32>
    %c0_162 = arith.constant 0 : index
    %c0_163 = arith.constant 0 : index
    %312 = vector.load %arg5[%c0_162, %c0_163] : memref<8x128xf32, #tpu.memory_space<vmem>>, vector<8x128xf32>
    tpu.vector_store %arg5[%c0_162, %c0_163], %309 {strides = array<i32>} : memref<8x128xf32, #tpu.memory_space<vmem>>, vector<8x128xf32>,
    %c0_164 = arith.constant 0 : index
    %c0_165 = arith.constant 0 : index
    %313 = vector.load %arg4[%c0_164, %c0_165] : memref<8x128xf32, #tpu.memory_space<vmem>>, vector<8x128xf32>
    tpu.vector_store %arg4[%c0_164, %c0_165], %311 {strides = array<i32>} : memref<8x128xf32, #tpu.memory_space<vmem>>, vector<8x128xf32>,
    %314 = arith.index_cast %c6_i32 : i32 to index
    %c0_166 = arith.constant 0 : index
    %c0_167 = arith.constant 0 : index
    %315 = vector.load %arg3[%314, %c0_166, %c0_167] : memref<8x8x128xf32, #tpu.memory_space<vmem>>, vector<1x8x128xf32>
    %316 = vector.shape_cast %315 : vector<1x8x128xf32> to vector<8x128xf32>
    %317 = vector.shape_cast %311 : vector<8x128xf32> to vector<1x8x128xf32>
    tpu.vector_store %arg3[%314, %c0_166, %c0_167], %317 {strides = array<i32>} : memref<8x8x128xf32, #tpu.memory_space<vmem>>, vector<1x8x128xf32>,
    %c7_i32 = arith.constant 7 : i32
    %c0_168 = arith.constant 0 : index
    %c0_169 = arith.constant 0 : index
    %318 = vector.load %arg4[%c0_168, %c0_169] : memref<8x128xf32, #tpu.memory_space<vmem>>, vector<8x128xf32>
    %c0_170 = arith.constant 0 : index
    %c0_171 = arith.constant 0 : index
    %319 = vector.load %arg5[%c0_170, %c0_171] : memref<8x128xf32, #tpu.memory_space<vmem>>, vector<8x128xf32>
    %320 = arith.index_cast %c7_i32 : i32 to index
    %c0_172 = arith.constant 0 : index
    %c0_173 = arith.constant 0 : index
    %321 = vector.load %arg1[%320, %c0_172, %c0_173] : memref<8x8x512xf32, #tpu.memory_space<vmem>>, vector<1x8x512xf32>
    %322 = vector.shape_cast %321 : vector<1x8x512xf32> to vector<8x512xf32>
    %c0_174 = arith.constant 0 : index
    %c0_175 = arith.constant 0 : index
    %323 = vector.load %arg2[%c0_174, %c0_175] : memref<128x512xf32, #tpu.memory_space<vmem>>, vector<128x512xf32>
    %cst_176 = arith.constant dense<0.000000e+00> : vector<8x512xf32>
    %324 = tpu.matmul %318, %323, %cst_176 {dimension_numbers = #tpu.dot_dimension_numbers<[1], [0], [0], [1], [0, 0, 1, 1], [], []>} : vector<8x128xf32>, vector<128x512xf32>, vector<8x512xf32> -> vector<8x512xf32>
    %325 = arith.addf %322, %324 : vector<8x512xf32>
    %326 = vector.extract_strided_slice %325 {offsets = [0, 0], sizes = [8, 128], strides = [1, 1]} : vector<8x512xf32> to vector<8x128xf32>
    %cst_177 = arith.constant 5.000000e-01 : f32
    %327 = vector.broadcast %cst_177 : f32 to vector<8x128xf32>
    %328 = arith.mulf %327, %326 : vector<8x128xf32>
    %329 = math.tanh %328 : vector<8x128xf32>
    %cst_178 = arith.constant 5.000000e-01 : f32
    %330 = vector.broadcast %cst_178 : f32 to vector<8x128xf32>
    %331 = arith.mulf %330, %329 : vector<8x128xf32>
    %cst_179 = arith.constant 5.000000e-01 : f32
    %332 = vector.broadcast %cst_179 : f32 to vector<8x128xf32>
    %333 = arith.addf %331, %332 : vector<8x128xf32>
    %334 = vector.extract_strided_slice %325 {offsets = [0, 128], sizes = [8, 128], strides = [1, 1]} : vector<8x512xf32> to vector<8x128xf32>
    %cst_180 = arith.constant 5.000000e-01 : f32
    %335 = vector.broadcast %cst_180 : f32 to vector<8x128xf32>
    %336 = arith.mulf %335, %334 : vector<8x128xf32>
    %337 = math.tanh %336 : vector<8x128xf32>
    %cst_181 = arith.constant 5.000000e-01 : f32
    %338 = vector.broadcast %cst_181 : f32 to vector<8x128xf32>
    %339 = arith.mulf %338, %337 : vector<8x128xf32>
    %cst_182 = arith.constant 5.000000e-01 : f32
    %340 = vector.broadcast %cst_182 : f32 to vector<8x128xf32>
    %341 = arith.addf %339, %340 : vector<8x128xf32>
    %342 = vector.extract_strided_slice %325 {offsets = [0, 256], sizes = [8, 128], strides = [1, 1]} : vector<8x512xf32> to vector<8x128xf32>
    %343 = math.tanh %342 : vector<8x128xf32>
    %344 = vector.extract_strided_slice %325 {offsets = [0, 384], sizes = [8, 128], strides = [1, 1]} : vector<8x512xf32> to vector<8x128xf32>
    %cst_183 = arith.constant 5.000000e-01 : f32
    %345 = vector.broadcast %cst_183 : f32 to vector<8x128xf32>
    %346 = arith.mulf %345, %344 : vector<8x128xf32>
    %347 = math.tanh %346 : vector<8x128xf32>
    %cst_184 = arith.constant 5.000000e-01 : f32
    %348 = vector.broadcast %cst_184 : f32 to vector<8x128xf32>
    %349 = arith.mulf %348, %347 : vector<8x128xf32>
    %cst_185 = arith.constant 5.000000e-01 : f32
    %350 = vector.broadcast %cst_185 : f32 to vector<8x128xf32>
    %351 = arith.addf %349, %350 : vector<8x128xf32>
    %352 = arith.mulf %341, %319 : vector<8x128xf32>
    %353 = arith.mulf %333, %343 : vector<8x128xf32>
    %354 = arith.addf %352, %353 : vector<8x128xf32>
    %355 = math.tanh %354 : vector<8x128xf32>
    %356 = arith.mulf %351, %355 : vector<8x128xf32>
    %c0_186 = arith.constant 0 : index
    %c0_187 = arith.constant 0 : index
    %357 = vector.load %arg5[%c0_186, %c0_187] : memref<8x128xf32, #tpu.memory_space<vmem>>, vector<8x128xf32>
    tpu.vector_store %arg5[%c0_186, %c0_187], %354 {strides = array<i32>} : memref<8x128xf32, #tpu.memory_space<vmem>>, vector<8x128xf32>,
    %c0_188 = arith.constant 0 : index
    %c0_189 = arith.constant 0 : index
    %358 = vector.load %arg4[%c0_188, %c0_189] : memref<8x128xf32, #tpu.memory_space<vmem>>, vector<8x128xf32>
    tpu.vector_store %arg4[%c0_188, %c0_189], %356 {strides = array<i32>} : memref<8x128xf32, #tpu.memory_space<vmem>>, vector<8x128xf32>,
    %359 = arith.index_cast %c7_i32 : i32 to index
    %c0_190 = arith.constant 0 : index
    %c0_191 = arith.constant 0 : index
    %360 = vector.load %arg3[%359, %c0_190, %c0_191] : memref<8x8x128xf32, #tpu.memory_space<vmem>>, vector<1x8x128xf32>
    %361 = vector.shape_cast %360 : vector<1x8x128xf32> to vector<8x128xf32>
    %362 = vector.shape_cast %356 : vector<8x128xf32> to vector<1x8x128xf32>
    tpu.vector_store %arg3[%359, %c0_190, %c0_191], %362 {strides = array<i32>} : memref<8x8x128xf32, #tpu.memory_space<vmem>>, vector<1x8x128xf32>,
    %c8_i32 = arith.constant 8 : i32
    return
  }
  func.func @transform_0(%arg0: i32) -> (i32, i32, i32) {
    %c0_i32 = arith.constant 0 : i32
    %c0_i32_0 = arith.constant 0 : i32
    %c0_i32_1 = arith.constant 0 : i32
    return %arg0, %c0_i32, %c0_i32_0 : i32, i32, i32
  }
  func.func @transform_1(%arg0: i32) -> (i32, i32) {
    %c0_i32 = arith.constant 0 : i32
    %c0_i32_0 = arith.constant 0 : i32
    %c0_i32_1 = arith.constant 0 : i32
    return %c0_i32, %c0_i32_0 : i32, i32
  }
  func.func @transform_2(%arg0: i32) -> (i32, i32, i32) {
    %c0_i32 = arith.constant 0 : i32
    %c0_i32_0 = arith.constant 0 : i32
    %c0_i32_1 = arith.constant 0 : i32
    return %arg0, %c0_i32, %c0_i32_0 : i32, i32, i32
  }
}

</mosaic_0001>

<bundles_post_ra>
// kernel: lstm2seq_encoder_forward.1
= control target key start
LH: loop header
LB: loop body
LE: loop exit
PB: predicated region body
PF: predicated region fallthrough
CT: control target
= control target key end

     0   :  { %s2798_s9 = smov 0   ;;  %s3702_s0 = inlined_call_operand.vmem [shape: f32[16,8,512], index: 0, kind: input, shape index: {}]   ;;  %s3703_s1 = inlined_call_operand.vmem [shape: f32[128,512], index: 1, kind: input, shape index: {}]   ;;  %s3704_s2 = inlined_call_operand.vmem [shape: f32[16,8,128], index: 2, kind: output, shape index: {}]  }
   0x1 LB: > { %s2122_s10 = sadd.s32 4294967295, %s2779_s9   ;;  %p2126_p0 = scmp.ge.s32.totalorder %s2779_s9, 1  ;;  %s2779_s9 = sphi %s2798_s9, %s12_s9  }
   0x2   : > { %p114_p1 = scmp.lt.s32.totalorder %s2779_s9, 3 }
   0x4   : > { %p115_p2 = pnand %p2126_p0, %p114_p1 }
   0x5   : > { %s2127_s11 = sshll.u32 (!%p115_p2), %s2122_s10, 3  ;;  %p2132_p4 = scmp.ne.s32.totalorder (!%p115_p2), %s2122_s10, 0 }
   0x6   : > { %118 = sbr.rel (%p115_p2) target bundleno = 2049 (0x801), region = 28  ;;  %p138_p3 = scmp.lt.s32.totalorder (!%p115_p2), %s2127_s11, 15 }
   0xd   : > { %s3706_s11 = smov (!%p138_p3, %s2127_s11), 15  ;;  %153 = sbr.rel (%p2132_p4) target bundleno = 20 (0x14), region = 32 }
   0xe   : > { %s2170_s12 = sshll.u32 %s3706_s11, 5  ;;  %s2131_s13 = sshll.u32 %s3706_s11, 3  ;;  %v2781_v0 = vmov (!%p2132_p4), 0.0  }
   0xf   : > { %s2809_s16 = scalar_lea.vmem %s3702_s0, %s2170_s12  ;;  %s2814_s19 = scalar_lea.vmem %s3704_s2, %s2131_s13  ;;  %154 = vst [vmem:[#allocation2] sm:$0xff] (!%p2132_p4), %v2781_v0  ;;  %155 = vst [vmem:[#allocation3] sm:$0xff] (!%p2132_p4), %v2781_v0 }
  0x14 PF: > { %v163_v1 = vld [vmem:[%s3703_s1 + $0x8] sm:$0xff]  ;;  %v162_v3 = vld [vmem:[%s3703_s1] sm:$0xff]  ;;  %v2782_v8 = vmov 0.0   ;;  %v165_v13 = vld [vmem:[%s3703_s1 + $0x18] sm:$0xff] }
  0x15   : > { %v167_v2 = vld [vmem:[%s3703_s1 + $0x28] sm:$0xff]  ;;  %v166_v5 = vld [vmem:[%s3703_s1 + $0x20] sm:$0xff]  ;;  %290 = vmatprep.mubr.f32.mxu0 %v2782_v8  ;;  %361 = vmatprep.mubr.f32.mxu1 %v2782_v8  ;;  %v169_v14 = vld [vmem:[%s3703_s1 + $0x38] sm:$0xff] }
  0x16   : > { %v2825_v4 = vpack.c.bf16 %v167_v2, %v163_v1  ;;  %v171_v6 = vld [vmem:[%s3703_s1 + $0x48] sm:$0xff]  ;;  %v2838_v9 = vpack.c.bf16 %v166_v5, %v162_v3  ;;  %v170_v11 = vld [vmem:[%s3703_s1 + $0x40] sm:$0xff]  ;;  %v164_v15 = vld [vmem:[%s3703_s1 + $0x10] sm:$0xff]  ;;  %v2864_v18 = vpack.c.bf16 %v169_v14, %v165_v13 }
  0x17   : > { %v175_v7 = vld [vmem:[%s3703_s1 + $0x68] sm:$0xff]  ;;  %v174_v12 = vld [vmem:[%s3703_s1 + $0x60] sm:$0xff]  ;;  %v168_v16 = vld [vmem:[%s3703_s1 + $0x30] sm:$0xff] }
  0x18   : > { %v2840_v10 = vpack.c.bf16 %v175_v7, %v171_v6  ;;  %2172 = vmatprep.subr.bf16.mxu0 %v2825_v4  ;;  %v2862_v17 = vpack.c.bf16 %v174_v12, %v170_v11  ;;  %v2866_v19 = vpack.c.bf16 %v168_v16, %v164_v15  ;;  %v179_v20 = vld [vmem:[%s3703_s1 + $0x88] sm:$0xff]  ;;  %v178_v22 = vld [vmem:[%s3703_s1 + $0x80] sm:$0xff]  ;;  %v173_v25 = vld [vmem:[%s3703_s1 + $0x58] sm:$0xff]  ;;  %2204 = vmatprep.subr.bf16.mxu1 %v2864_v18 }
  0x19   : > { %2174 = vmatpush1.bf16.msra.mxu0 %v2838_v9  ;;  %v183_v21 = vld [vmem:[%s3703_s1 + $0xa8] sm:$0xff]  ;;  %v182_v24 = vld [vmem:[%s3703_s1 + $0xa0] sm:$0xff]  ;;  %v177_v26 = vld [vmem:[%s3703_s1 + $0x78] sm:$0xff] }
  0x1a   : > { %2176 = vmatprep.subr.bf16.mxu0 %v2840_v10  ;;  %v2878_v23 = vpack.c.bf16 %v183_v21, %v179_v20  ;;  %v2890_v27 = vpack.c.bf16 %v177_v26, %v173_v25  ;;  %v172_v28 = vld [vmem:[%s3703_s1 + $0x50] sm:$0xff]  ;;  %v187_v30 = vld [vmem:[%s3703_s1 + $0xc8] sm:$0xff]  ;;  %2206 = vmatpush1.bf16.msra.mxu1 %v2866_v19  ;;  %v2908_v33 = vpack.c.bf16 %v182_v24, %v178_v22  ;;  %v181_v34 = vld [vmem:[%s3703_s1 + $0x98] sm:$0xff] }
  0x1b   : > { %v176_v29 = vld [vmem:[%s3703_s1 + $0x70] sm:$0xff]  ;;  %v191_v32 = vld [vmem:[%s3703_s1 + $0xe8] sm:$0xff]  ;;  %v185_v35 = vld [vmem:[%s3703_s1 + $0xb8] sm:$0xff] }
  0x1c   : > { %v2902_v31 = vpack.c.bf16 %v176_v29, %v172_v28  ;;  %2208 = vmatprep.subr.bf16.mxu1 %v2890_v27  ;;  %v180_v36 = vld [vmem:[%s3703_s1 + $0x90] sm:$0xff]  ;;  %v2921_v37 = vpack.c.bf16 %v191_v32, %v187_v30  ;;  %v186_v38 = vld [vmem:[%s3703_s1 + $0xc0] sm:$0xff]  ;;  %v2929_v40 = vpack.c.bf16 %v185_v35, %v181_v34  ;;  %v195_v42 = vld [vmem:[%s3703_s1 + $0x108] sm:$0xff] }
  0x1d   : > { %2178 = vmatpush1.bf16.msra.mxu0 %v2862_v17  ;;  %v190_v39 = vld [vmem:[%s3703_s1 + $0xe0] sm:$0xff]  ;;  %v184_v41 = vld [vmem:[%s3703_s1 + $0xb0] sm:$0xff]  ;;  %v199_v43 = vld [vmem:[%s3703_s1 + $0x128] sm:$0xff] }
  0x1e   : > { %2180 = vmatprep.subr.bf16.mxu0 %v2878_v23  ;;  %v189_v44 = vld [vmem:[%s3703_s1 + $0xd8] sm:$0xff]  ;;  %2210 = vmatpush1.bf16.msra.mxu1 %v2902_v31  ;;  %v2944_v45 = vpack.c.bf16 %v184_v41, %v180_v36  ;;  %v2950_v47 = vpack.c.bf16 %v190_v39, %v186_v38  ;;  %v194_v48 = vld [vmem:[%s3703_s1 + $0x100] sm:$0xff]  ;;  %v188_v50 = vld [vmem:[%s3703_s1 + $0xd0] sm:$0xff]  ;;  %v2965_v52 = vpack.c.bf16 %v199_v43, %v195_v42 }
  0x1f   : > { %v193_v46 = vld [vmem:[%s3703_s1 + $0xf8] sm:$0xff]  ;;  %2212 = vmatprep.subr.bf16.mxu1 %v2929_v40  ;;  %v192_v51 = vld [vmem:[%s3703_s1 + $0xf0] sm:$0xff]  ;;  %v198_v53 = vld [vmem:[%s3703_s1 + $0x120] sm:$0xff] }
  0x20   : > { %v2956_v49 = vpack.c.bf16 %v193_v46, %v189_v44  ;;  %v197_v54 = vld [vmem:[%s3703_s1 + $0x118] sm:$0xff]  ;;  %v203_v56 = vld [vmem:[%s3703_s1 + $0x148] sm:$0xff]  ;;  %v2983_v58 = vpack.c.bf16 %v192_v51, %v188_v50  ;;  %v2986_v59 = vpack.c.bf16 %v198_v53, %v194_v48  ;;  %v202_v60 = vld [vmem:[%s3703_s1 + $0x140] sm:$0xff] }
  0x21   : > { %2182 = vmatpush1.bf16.msra.mxu0 %v2908_v33  ;;  %v201_v55 = vld [vmem:[%s3703_s1 + $0x138] sm:$0xff]  ;;  %v207_v57 = vld [vmem:[%s3703_s1 + $0x168] sm:$0xff]  ;;  %v196_v62 = vld [vmem:[%s3703_s1 + $0x110] sm:$0xff] }
  0x22   : > { %2184 = vmatprep.subr.bf16.mxu0 %v2921_v37  ;;  %2214 = vmatpush1.bf16.msra.mxu1 %v2944_v45  ;;  %v2992_v61 = vpack.c.bf16 %v201_v55, %v197_v54  ;;  %v200_v63 = vld [vmem:[%s3703_s1 + $0x130] sm:$0xff]  ;;  %v3001_v0 = vpack.c.bf16 %v207_v57, %v203_v56  ;;  %v206_v1 = vld [vmem:[%s3703_s1 + $0x160] sm:$0xff]  ;;  %v205_v2 = vld [vmem:[%s3703_s1 + $0x158] sm:$0xff] }
  0x23   : > { %2216 = vmatprep.subr.bf16.mxu1 %v2956_v49  ;;  %v209_v3 = vld [vmem:[%s3703_s1 + $0x178] sm:$0xff]  ;;  %v211_v5 = vld [vmem:[%s3703_s1 + $0x188] sm:$0xff]  ;;  %v3019_v7 = vpack.c.bf16 %v200_v63, %v196_v62  ;;  %v3022_v11 = vpack.c.bf16 %v206_v1, %v202_v60  ;;  %v210_v12 = vld [vmem:[%s3703_s1 + $0x180] sm:$0xff] }
  0x24   : > { %v215_v6 = vld [vmem:[%s3703_s1 + $0x1a8] sm:$0xff]  ;;  %v3028_v13 = vpack.c.bf16 %v209_v3, %v205_v2  ;;  %v204_v14 = vld [vmem:[%s3703_s1 + $0x150] sm:$0xff]  ;;  %v214_v20 = vld [vmem:[%s3703_s1 + $0x1a0] sm:$0xff] }
  0x25   : > { %2186 = vmatpush1.bf16.msra.mxu0 %v2950_v47  ;;  %v208_v15 = vld [vmem:[%s3703_s1 + $0x170] sm:$0xff]  ;;  %v3037_v16 = vpack.c.bf16 %v215_v6, %v211_v5  ;;  %v213_v21 = vld [vmem:[%s3703_s1 + $0x198] sm:$0xff]  ;;  %v219_v24 = vld [vmem:[%s3703_s1 + $0x1c8] sm:$0xff]  ;;  %v3058_v28 = vpack.c.bf16 %v214_v20, %v210_v12 }
  0x26   : > { %2188 = vmatprep.subr.bf16.mxu0 %v2965_v52  ;;  %2218 = vmatpush1.bf16.msra.mxu1 %v2983_v58  ;;  %v217_v22 = vld [vmem:[%s3703_s1 + $0x1b8] sm:$0xff]  ;;  %v223_v25 = vld [vmem:[%s3703_s1 + $0x1e8] sm:$0xff]  ;;  %v3055_v26 = vpack.c.bf16 %v208_v15, %v204_v14  ;;  %v218_v29 = vld [vmem:[%s3703_s1 + $0x1c0] sm:$0xff] }
  0x27   : > { %2220 = vmatprep.subr.bf16.mxu1 %v2992_v61  ;;  %v3064_v30 = vpack.c.bf16 %v217_v22, %v213_v21  ;;  %v212_v32 = vld [vmem:[%s3703_s1 + $0x190] sm:$0xff]  ;;  %v3073_v35 = vpack.c.bf16 %v223_v25, %v219_v24  ;;  %v222_v36 = vld [vmem:[%s3703_s1 + $0x1e0] sm:$0xff]  ;;  %v221_v38 = vld [vmem:[%s3703_s1 + $0x1d8] sm:$0xff] }
  0x28   : > { %v216_v34 = vld [vmem:[%s3703_s1 + $0x1b0] sm:$0xff]  ;;  %v225_v39 = vld [vmem:[%s3703_s1 + $0x1f8] sm:$0xff]  ;;  %v3088_v42 = vpack.c.bf16 %v222_v36, %v218_v29  ;;  %v156_v50 = vld [vmem:[#allocation2] sm:$0xff] }
  0x29   : > { %2190 = vmatpush1.bf16.msra.mxu0 %v2986_v59  ;;  %v3085_v41 = vpack.c.bf16 %v216_v34, %v212_v32  ;;  %v3091_v43 = vpack.c.bf16 %v225_v39, %v221_v38  ;;  %v220_v44 = vld [vmem:[%s3703_s1 + $0x1d0] sm:$0xff]  ;;  %v158_v51 = vld [vmem:[%s2809_s16] sm:$0xff]  ;;  %v159_v53 = vld [vmem:[%s2809_s16 + $0x8] sm:$0xff] }
  0x2a   : > { %2192 = vmatprep.subr.bf16.mxu0 %v3001_v0  ;;  %2222 = vmatpush1.bf16.msra.mxu1 %v3019_v7  ;;  %v224_v46 = vld [vmem:[%s3703_s1 + $0x1f0] sm:$0xff]  ;;  %v161_v5 = vld [vmem:[%s2809_s16 + $0x18] sm:$0xff]  ;;  %v157_v25 = vld [vmem:[#allocation3] sm:$0xff] }
  0x2b   : > { %2224 = vmatprep.subr.bf16.mxu1 %v3028_v13  ;;  %v3101_v48 = vpack.c.bf16 %v224_v46, %v220_v44  ;;  %v160_v57 = vld [vmem:[%s2809_s16 + $0x10] sm:$0xff] }
  0x2d   : > { %2194 = vmatpush1.bf16.msra.mxu0 %v3022_v11 }
  0x2e   : > { %2196 = vmatprep.subr.bf16.mxu0 %v3037_v16  ;;  %2226 = vmatpush1.bf16.msra.mxu1 %v3055_v26 }
  0x2f   : > { %2228 = vmatprep.subr.bf16.mxu1 %v3064_v30 }
  0x31   : > { %2198 = vmatpush1.bf16.msra.mxu0 %v3058_v28 }
  0x32   : > { %2200 = vmatprep.subr.bf16.mxu0 %v3073_v35  ;;  %2230 = vmatpush1.bf16.msra.mxu1 %v3085_v41 }
  0x33   : > { %2232 = vmatprep.subr.bf16.mxu1 %v3091_v43 }
  0x35   : > { %2202 = vmatpush1.bf16.msra.mxu0 %v3088_v42 }
  0x36   : > { %2236 = vmatprep.subr.bf16.mxu0 %v2825_v4  ;;  %2234 = vmatpush1.bf16.msra.mxu1 %v3101_v48 }
  0x37   : > { %2268 = vmatprep.subr.bf16.mxu1 %v2864_v18 }
  0x38   : > { %291 = vmatmul.mubr.f32.vlgmr.msra.gmra.mrb[0].mxu0 %v156_v50 }
  0x39   : > { %2238 = vmatpush1.bf16.msra.mxu0 %v2838_v9  ;;  %528 = vmatprep.mubr.f32.mxu0 %v2782_v8 }
  0x3a   : > { %2240 = vmatprep.subr.bf16.mxu0 %v2840_v10  ;;  %362 = vmatmul.mubr.f32.vlgmr.msra.gmra.mrb[0].mxu1 %v156_v50 }
  0x3b   : > { %2270 = vmatpush1.bf16.msra.mxu1 %v2866_v19  ;;  %599 = vmatprep.mubr.f32.mxu1 %v2782_v8 }
  0x3c   : > { %2272 = vmatprep.subr.bf16.mxu1 %v2890_v27 }
  0x3d   : > { %2242 = vmatpush1.bf16.msra.mxu0 %v2862_v17 }
  0x3e   : > { %2244 = vmatprep.subr.bf16.mxu0 %v2878_v23 }
  0x3f   : > { %2274 = vmatpush1.bf16.msra.mxu1 %v2902_v31 }
  0x40   : > { %2276 = vmatprep.subr.bf16.mxu1 %v2929_v40 }
  0x41   : > { %2246 = vmatpush1.bf16.msra.mxu0 %v2908_v33 }
  0x42   : > { %2248 = vmatprep.subr.bf16.mxu0 %v2921_v37 }
  0x43   : > { %2278 = vmatpush1.bf16.msra.mxu1 %v2944_v45 }
  0x44   : > { %2280 = vmatprep.subr.bf16.mxu1 %v2956_v49 }
  0x45   : > { %2250 = vmatpush1.bf16.msra.mxu0 %v2950_v47 }
  0x46   : > { %2252 = vmatprep.subr.bf16.mxu0 %v2965_v52 }
  0x47   : > { %2282 = vmatpush1.bf16.msra.mxu1 %v2983_v58 }
  0x48   : > { %2284 = vmatprep.subr.bf16.mxu1 %v2992_v61 }
  0x49   : > { %2254 = vmatpush1.bf16.msra.mxu0 %v2986_v59 }
  0x4a   : > { %2256 = vmatprep.subr.bf16.mxu0 %v3001_v0 }
  0x4b   : > { %2286 = vmatpush1.bf16.msra.mxu1 %v3019_v7 }
  0x4c   : > { %2288 = vmatprep.subr.bf16.mxu1 %v3028_v13 }
  0x4d   : > { %2258 = vmatpush1.bf16.msra.mxu0 %v3022_v11 }
  0x4e   : > { %2260 = vmatprep.subr.bf16.mxu0 %v3037_v16 }
  0x4f   : > { %2290 = vmatpush1.bf16.msra.mxu1 %v3055_v26 }
  0x50   : > { %2292 = vmatprep.subr.bf16.mxu1 %v3064_v30 }
  0x51   : > { %2262 = vmatpush1.bf16.msra.mxu0 %v3058_v28 }
  0x52   : > { %2264 = vmatprep.subr.bf16.mxu0 %v3073_v35 }
  0x53   : > { %2294 = vmatpush1.bf16.msra.mxu1 %v3085_v41 }
  0x54   : > { %2296 = vmatprep.subr.bf16.mxu1 %v3091_v43 }
  0x55   : > { %2266 = vmatpush1.bf16.msra.mxu0 %v3088_v42 }
  0x56   : > { %2300 = vmatprep.subr.bf16.mxu0 %v2825_v4 }
  0x57   : > { %2298 = vmatpush1.bf16.msra.mxu1 %v3101_v48 }
  0x58   : > { %2332 = vmatprep.subr.bf16.mxu1 %v2864_v18 }
 0x10b   : > { %v292_v54 = vpop.f32.mrb[0].mxu0 }
 0x10c   : > { %v368_v55 = vadd.f32 %v292_v54, %v158_v51  ;;  %v294_v56 = vpop.f32.mrb[1].mxu0 }
 0x10d   : > { %v369_v60 = vadd.f32 %v294_v56, %v159_v53  ;;  %v363_v63 = vpop.f32.mrb[0].mxu1  ;;  %v2135_v53 = vld [vmem:[%s2809_s16 + $0x30] sm:$0xff] }
 0x10e   : > { %v372_v62 = vmul.f32 0.5, %v368_v55  ;;  %v370_v2 = vadd.f32 %v363_v63, %v160_v57  ;;  %v365_v3 = vpop.f32.mrb[1].mxu1  ;;  %v2136_v57 = vld [vmem:[%s2809_s16 + $0x38] sm:$0xff] }
 0x10f   : > { %v376_v1 = vmul.f32 0.5, %v369_v60  ;;  %v371_v6 = vadd.f32 %v365_v3, %v161_v5 }
 0x110   : > { %2693 = vtanh.f32 %v372_v62 }
 0x111   : > { %2695 = vtanh.f32 %v376_v1  ;;  %v381_v12 = vmul.f32 0.5, %v371_v6 }
 0x112   : > { %2697 = vtanh.f32 %v370_v2 }
 0x113   : > { %2699 = vtanh.f32 %v381_v12 }
 0x11a   : > { %v2694_v14 = vpop.eup %2693 }
 0x11b   : > { %v2696_v15 = vpop.eup %2695  ;;  %v374_v20 = vmul.f32 0.5, %v2694_v14 }
 0x11c   : > { %v2698_v21 = vpop.eup %2697  ;;  %v378_v22 = vmul.f32 0.5, %v2696_v15 }
 0x11d   : > { %v375_v24 = vadd.f32 0.5, %v374_v20  ;;  %v2700_v38 = vpop.eup %2699 }
 0x11e   : > { %v379_v29 = vadd.f32 0.5, %v378_v22  ;;  %v383_v39 = vmul.f32 0.5, %v2700_v38  ;;  %v2140_v38 = vld [vmem:[%s2809_s16 + $0x50] sm:$0xff] }
 0x11f   : > { %v386_v32 = vmul.f32 %v2698_v21, %v375_v24 }
 0x120   : > { %v385_v34 = vmul.f32 %v379_v29, %v157_v25  ;;  %v384_v44 = vadd.f32 0.5, %v383_v39  ;;  %v2139_v25 = vld [vmem:[%s2809_s16 + $0x48] sm:$0xff] }
 0x122   : > { %v3146_v36 = vadd.f32 %v386_v32, %v385_v34 }
 0x124   : > { %2701 = vtanh.f32 %v3146_v36 }
 0x12e   : > { %v2702_v46 = vpop.eup %2701 }
 0x12f   : > { %v389_v50 = vmul.f32 %v2702_v46, %v384_v44 }
 0x131   : > { %392 = vst [vmem:[%s2814_s19] sm:$0xff] %v389_v50  ;;  %529 = vmatmul.mubr.f32.vlgmr.msra.gmra.mrb[2].mxu0 %v389_v50  ;;  %600 = vmatmul.mubr.f32.vlgmr.msra.gmra.mrb[2].mxu1 %v389_v50 }
 0x132   : > { %2302 = vmatpush1.bf16.msra.mxu0 %v2838_v9  ;;  %2334 = vmatpush1.bf16.msra.mxu1 %v2866_v19 }
 0x133   : > { %2304 = vmatprep.subr.bf16.mxu0 %v2840_v10  ;;  %2336 = vmatprep.subr.bf16.mxu1 %v2890_v27 }
 0x134   : > { %767 = vmatprep.mubr.f32.mxu0 %v2782_v8  ;;  %838 = vmatprep.mubr.f32.mxu1 %v2782_v8 }
 0x136   : > { %2306 = vmatpush1.bf16.msra.mxu0 %v2862_v17  ;;  %2338 = vmatpush1.bf16.msra.mxu1 %v2902_v31  ;;  %v2133_v17 = vld [vmem:[%s2809_s16 + $0x20] sm:$0xff] }
 0x137   : > { %2308 = vmatprep.subr.bf16.mxu0 %v2878_v23  ;;  %2340 = vmatprep.subr.bf16.mxu1 %v2929_v40 }
 0x13a   : > { %2310 = vmatpush1.bf16.msra.mxu0 %v2908_v33  ;;  %2342 = vmatpush1.bf16.msra.mxu1 %v2944_v45  ;;  %v2134_v33 = vld [vmem:[%s2809_s16 + $0x28] sm:$0xff] }
 0x13b   : > { %2312 = vmatprep.subr.bf16.mxu0 %v2921_v37  ;;  %2344 = vmatprep.subr.bf16.mxu1 %v2956_v49 }
 0x13e   : > { %2314 = vmatpush1.bf16.msra.mxu0 %v2950_v47  ;;  %2346 = vmatpush1.bf16.msra.mxu1 %v2983_v58 }
 0x13f   : > { %2316 = vmatprep.subr.bf16.mxu0 %v2965_v52  ;;  %2348 = vmatprep.subr.bf16.mxu1 %v2992_v61 }
 0x142   : > { %2318 = vmatpush1.bf16.msra.mxu0 %v2986_v59  ;;  %2350 = vmatpush1.bf16.msra.mxu1 %v3019_v7 }
 0x143   : > { %2320 = vmatprep.subr.bf16.mxu0 %v3001_v0  ;;  %2352 = vmatprep.subr.bf16.mxu1 %v3028_v13 }
 0x146   : > { %2322 = vmatpush1.bf16.msra.mxu0 %v3022_v11  ;;  %2354 = vmatpush1.bf16.msra.mxu1 %v3055_v26 }
 0x147   : > { %2324 = vmatprep.subr.bf16.mxu0 %v3037_v16  ;;  %2356 = vmatprep.subr.bf16.mxu1 %v3064_v30 }
 0x14a   : > { %2326 = vmatpush1.bf16.msra.mxu0 %v3058_v28  ;;  %2358 = vmatpush1.bf16.msra.mxu1 %v3085_v41 }
 0x14b   : > { %2328 = vmatprep.subr.bf16.mxu0 %v3073_v35  ;;  %2360 = vmatprep.subr.bf16.mxu1 %v3091_v43 }
 0x14e   : > { %2330 = vmatpush1.bf16.msra.mxu0 %v3088_v42  ;;  %2362 = vmatpush1.bf16.msra.mxu1 %v3101_v48 }
 0x14f   : > { %2364 = vmatprep.subr.bf16.mxu0 %v2825_v4  ;;  %2396 = vmatprep.subr.bf16.mxu1 %v2864_v18 }
 0x204   : > { %v530_v47 = vpop.f32.mrb[2].mxu0  ;;  %v601_v59 = vpop.f32.mrb[2].mxu1 }
 0x205   : > { %v606_v11 = vadd.f32 %v2133_v17, %v530_v47  ;;  %v532_v28 = vpop.f32.mrb[3].mxu0  ;;  %v603_v51 = vpop.f32.mrb[3].mxu1  ;;  %v608_v42 = vadd.f32 %v2135_v53, %v601_v59  ;;  %v2141_v17 = vld [vmem:[%s2809_s16 + $0x58] sm:$0xff] }
 0x206   : > { %v607_v54 = vadd.f32 %v2134_v33, %v532_v28  ;;  %v609_v4 = vadd.f32 %v2136_v57, %v603_v51 }
 0x207   : > { %v610_v55 = vmul.f32 0.5, %v606_v11 }
 0x208   : > { %v614_v56 = vmul.f32 0.5, %v607_v54  ;;  %v619_v60 = vmul.f32 0.5, %v609_v4 }
 0x209   : > { %2703 = vtanh.f32 %v610_v55 }
 0x20a   : > { %2705 = vtanh.f32 %v614_v56 }
 0x20b   : > { %2707 = vtanh.f32 %v608_v42 }
 0x20c   : > { %2709 = vtanh.f32 %v619_v60 }
 0x213   : > { %v2704_v62 = vpop.eup %2703 }
 0x214   : > { %v2706_v18 = vpop.eup %2705  ;;  %v612_v63 = vmul.f32 0.5, %v2704_v62 }
 0x215   : > { %v616_v1 = vmul.f32 0.5, %v2706_v18  ;;  %v2708_v3 = vpop.eup %2707 }
 0x216   : > { %v613_v2 = vadd.f32 0.5, %v612_v63  ;;  %v2710_v15 = vpop.eup %2709 }
 0x217   : > { %v617_v5 = vadd.f32 0.5, %v616_v1  ;;  %v621_v20 = vmul.f32 0.5, %v2710_v15  ;;  %v1118_v1 = vld [vmem:[%s3703_s1 + $0x8] sm:$0xff] }
 0x218   : > { %v624_v6 = vmul.f32 %v2708_v3, %v613_v2  ;;  %v1122_v2 = vld [vmem:[%s3703_s1 + $0x28] sm:$0xff]  ;;  %v1120_v3 = vld [vmem:[%s3703_s1 + $0x18] sm:$0xff] }
 0x219   : > { %v623_v12 = vmul.f32 %v617_v5, %v3146_v36  ;;  %v622_v21 = vadd.f32 0.5, %v621_v20  ;;  %v3301_v5 = vpack.c.bf16 %v1122_v2, %v1118_v1 }
 0x21b   : > { %v3189_v14 = vadd.f32 %v624_v6, %v623_v12  ;;  %v1124_v6 = vld [vmem:[%s3703_s1 + $0x38] sm:$0xff]  ;;  %v1117_v12 = vld [vmem:[%s3703_s1] sm:$0xff] }
 0x21c   : > { %v3312_v15 = vpack.c.bf16 %v1124_v6, %v1120_v3  ;;  %v1166_v3 = vld [vmem:[%s3703_s1 + $0x188] sm:$0xff] }
 0x21d   : > { %2711 = vtanh.f32 %v3189_v14  ;;  %v1170_v6 = vld [vmem:[%s3703_s1 + $0x1a8] sm:$0xff] }
 0x227   : > { %v2712_v22 = vpop.eup %2711 }
 0x228   : > { %v627_v24 = vmul.f32 %v2712_v22, %v622_v21  ;;  %v1119_v21 = vld [vmem:[%s3703_s1 + $0x10] sm:$0xff] }
 0x229   : > { %v1123_v22 = vld [vmem:[%s3703_s1 + $0x30] sm:$0xff] }
 0x22a   : > { %2137 = vst [vmem:[%s2814_s19 + $0x8] sm:$0xff] %v627_v24  ;;  %768 = vmatmul.mubr.f32.vlgmr.msra.gmra.mrb[4].mxu0 %v627_v24  ;;  %839 = vmatmul.mubr.f32.vlgmr.msra.gmra.mrb[4].mxu1 %v627_v24  ;;  %v3323_v24 = vpack.c.bf16 %v1123_v22, %v1119_v21  ;;  %v1172_v21 = vld [vmem:[%s3703_s1 + $0x1b8] sm:$0xff]  ;;  %v1167_v22 = vld [vmem:[%s3703_s1 + $0x190] sm:$0xff] }
 0x22b   : > { %2366 = vmatpush1.bf16.msra.mxu0 %v2838_v9  ;;  %2398 = vmatpush1.bf16.msra.mxu1 %v2866_v19  ;;  %v886_v9 = vld [vmem:[%s3703_s1 + $0x40] sm:$0xff] }
 0x22c   : > { %2368 = vmatprep.subr.bf16.mxu0 %v2840_v10  ;;  %2400 = vmatprep.subr.bf16.mxu1 %v2890_v27  ;;  %v890_v10 = vld [vmem:[%s3703_s1 + $0x60] sm:$0xff] }
 0x22d   : > { %1006 = vmatprep.mubr.f32.mxu0 %v2782_v8  ;;  %1077 = vmatprep.mubr.f32.mxu1 %v2782_v8  ;;  %v3218_v19 = vpack.c.bf16 %v890_v10, %v886_v9  ;;  %v894_v27 = vld [vmem:[%s3703_s1 + $0x80] sm:$0xff]  ;;  %v1126_v9 = vld [vmem:[%s3703_s1 + $0x48] sm:$0xff] }
 0x22e   : > { %v1130_v10 = vld [vmem:[%s3703_s1 + $0x68] sm:$0xff] }
 0x22f   : > { %2402 = vmatpush1.bf16.msra.mxu1 %v2902_v31  ;;  %2370 = vmatpush1.bf16.msra.mxu0 %v3218_v19  ;;  %v898_v31 = vld [vmem:[%s3703_s1 + $0xa0] sm:$0xff] }
 0x230   : > { %2404 = vmatprep.subr.bf16.mxu1 %v2929_v40  ;;  %2372 = vmatprep.subr.bf16.mxu0 %v2878_v23  ;;  %v3228_v40 = vpack.c.bf16 %v898_v31, %v894_v27  ;;  %v906_v23 = vld [vmem:[%s3703_s1 + $0xe0] sm:$0xff]  ;;  %v1128_v27 = vld [vmem:[%s3703_s1 + $0x58] sm:$0xff]  ;;  %v3337_v31 = vpack.c.bf16 %v1130_v10, %v1126_v9  ;;  %v1171_v9 = vld [vmem:[%s3703_s1 + $0x1b0] sm:$0xff] }
 0x233   : > { %2406 = vmatpush1.bf16.msra.mxu1 %v2944_v45  ;;  %2374 = vmatpush1.bf16.msra.mxu0 %v3228_v40  ;;  %v902_v45 = vld [vmem:[%s3703_s1 + $0xc0] sm:$0xff] }
 0x234   : > { %2408 = vmatprep.subr.bf16.mxu1 %v2956_v49  ;;  %2376 = vmatprep.subr.bf16.mxu0 %v2921_v37  ;;  %v3238_v49 = vpack.c.bf16 %v906_v23, %v902_v45  ;;  %v914_v37 = vld [vmem:[%s3703_s1 + $0x120] sm:$0xff]  ;;  %v1132_v45 = vld [vmem:[%s3703_s1 + $0x78] sm:$0xff]  ;;  %v1127_v23 = vld [vmem:[%s3703_s1 + $0x50] sm:$0xff] }
 0x237   : > { %2410 = vmatpush1.bf16.msra.mxu1 %v2983_v58  ;;  %2378 = vmatpush1.bf16.msra.mxu0 %v3238_v49  ;;  %v910_v58 = vld [vmem:[%s3703_s1 + $0x100] sm:$0xff] }
 0x238   : > { %2412 = vmatprep.subr.bf16.mxu1 %v2992_v61  ;;  %2380 = vmatprep.subr.bf16.mxu0 %v2965_v52  ;;  %v3248_v61 = vpack.c.bf16 %v914_v37, %v910_v58  ;;  %v918_v52 = vld [vmem:[%s3703_s1 + $0x140] sm:$0xff]  ;;  %v1131_v58 = vld [vmem:[%s3703_s1 + $0x70] sm:$0xff]  ;;  %v3348_v37 = vpack.c.bf16 %v1132_v45, %v1128_v27  ;;  %v3490_v27 = vpack.c.bf16 %v1171_v9, %v1167_v22  ;;  %v1174_v45 = vld [vmem:[%s3703_s1 + $0x1c8] sm:$0xff] }
 0x23b   : > { %2414 = vmatpush1.bf16.msra.mxu1 %v3019_v7  ;;  %2382 = vmatpush1.bf16.msra.mxu0 %v3248_v61  ;;  %v922_v7 = vld [vmem:[%s3703_s1 + $0x160] sm:$0xff] }
 0x23c   : > { %2416 = vmatprep.subr.bf16.mxu1 %v3028_v13  ;;  %2384 = vmatprep.subr.bf16.mxu0 %v3001_v0  ;;  %v3258_v13 = vpack.c.bf16 %v922_v7, %v918_v52  ;;  %v930_v0 = vld [vmem:[%s3703_s1 + $0x1a0] sm:$0xff]  ;;  %v3350_v52 = vpack.c.bf16 %v1131_v58, %v1127_v23  ;;  %v1134_v7 = vld [vmem:[%s3703_s1 + $0x88] sm:$0xff]  ;;  %v1176_v58 = vld [vmem:[%s3703_s1 + $0x1d8] sm:$0xff] }
 0x23d   : > { %v1178_v23 = vld [vmem:[%s3703_s1 + $0x1e8] sm:$0xff] }
 0x23f   : > { %2418 = vmatpush1.bf16.msra.mxu1 %v3055_v26  ;;  %2386 = vmatpush1.bf16.msra.mxu0 %v3258_v13  ;;  %v926_v26 = vld [vmem:[%s3703_s1 + $0x180] sm:$0xff] }
 0x240   : > { %2420 = vmatprep.subr.bf16.mxu1 %v3064_v30  ;;  %2388 = vmatprep.subr.bf16.mxu0 %v3037_v16  ;;  %v3268_v30 = vpack.c.bf16 %v930_v0, %v926_v26  ;;  %v938_v16 = vld [vmem:[%s3703_s1 + $0x1e0] sm:$0xff]  ;;  %v1138_v26 = vld [vmem:[%s3703_s1 + $0xa8] sm:$0xff]  ;;  %v1136_v0 = vld [vmem:[%s3703_s1 + $0x98] sm:$0xff] }
 0x243   : > { %2422 = vmatpush1.bf16.msra.mxu1 %v3085_v41  ;;  %2390 = vmatpush1.bf16.msra.mxu0 %v3268_v30  ;;  %v934_v41 = vld [vmem:[%s3703_s1 + $0x1c0] sm:$0xff] }
 0x244   : > { %2424 = vmatprep.subr.bf16.mxu1 %v3091_v43  ;;  %2392 = vmatprep.subr.bf16.mxu0 %v3073_v35  ;;  %v3278_v43 = vpack.c.bf16 %v938_v16, %v934_v41  ;;  %v3365_v41 = vpack.c.bf16 %v1138_v26, %v1134_v7  ;;  %v1140_v16 = vld [vmem:[%s3703_s1 + $0xb8] sm:$0xff]  ;;  %v3505_v7 = vpack.c.bf16 %v1178_v23, %v1174_v45 }
 0x245   : > { %v1180_v26 = vld [vmem:[%s3703_s1 + $0x1f8] sm:$0xff] }
 0x247   : > { %2426 = vmatpush1.bf16.msra.mxu1 %v3101_v48  ;;  %2394 = vmatpush1.bf16.msra.mxu0 %v3278_v43  ;;  %v2138_v48 = vld [vmem:[%s2809_s16 + $0x40] sm:$0xff] }
 0x248   : > { %2428 = vmatprep.subr.bf16.mxu0 %v3301_v5  ;;  %2460 = vmatprep.subr.bf16.mxu1 %v3312_v15 }
 0x2fd   : > { %v769_v29 = vpop.f32.mrb[4].mxu0  ;;  %v840_v32 = vpop.f32.mrb[4].mxu1 }
 0x2fe   : > { %v845_v34 = vadd.f32 %v2138_v48, %v769_v29  ;;  %v771_v36 = vpop.f32.mrb[5].mxu0  ;;  %v842_v35 = vpop.f32.mrb[5].mxu1  ;;  %v847_v50 = vadd.f32 %v2140_v38, %v840_v32  ;;  %v1135_v48 = vld [vmem:[%s3703_s1 + $0x90] sm:$0xff]  ;;  %v3376_v29 = vpack.c.bf16 %v1140_v16, %v1136_v0 }
 0x2ff   : > { %v846_v39 = vadd.f32 %v2139_v25, %v771_v36  ;;  %v848_v33 = vadd.f32 %v2141_v17, %v842_v35  ;;  %v1139_v25 = vld [vmem:[%s3703_s1 + $0xb0] sm:$0xff]  ;;  %v1146_v36 = vld [vmem:[%s3703_s1 + $0xe8] sm:$0xff]  ;;  %v1144_v35 = vld [vmem:[%s3703_s1 + $0xd8] sm:$0xff] }
 0x300   : > { %v849_v44 = vmul.f32 0.5, %v845_v34  ;;  %v3378_v32 = vpack.c.bf16 %v1139_v25, %v1135_v48  ;;  %v1142_v34 = vld [vmem:[%s3703_s1 + $0xc8] sm:$0xff]  ;;  %v1175_v0 = vld [vmem:[%s3703_s1 + $0x1d0] sm:$0xff]  ;;  %v3516_v48 = vpack.c.bf16 %v1180_v26, %v1176_v58 }
 0x301   : > { %v853_v46 = vmul.f32 0.5, %v846_v39  ;;  %v858_v47 = vmul.f32 0.5, %v848_v33  ;;  %v3393_v38 = vpack.c.bf16 %v1146_v36, %v1142_v34  ;;  %v1148_v39 = vld [vmem:[%s3703_s1 + $0xf8] sm:$0xff]  ;;  %v1150_v33 = vld [vmem:[%s3703_s1 + $0x108] sm:$0xff]  ;;  %v1179_v16 = vld [vmem:[%s3703_s1 + $0x1f0] sm:$0xff] }
 0x302   : > { %2713 = vtanh.f32 %v849_v44  ;;  %v1143_v44 = vld [vmem:[%s3703_s1 + $0xd0] sm:$0xff]  ;;  %v3518_v25 = vpack.c.bf16 %v1179_v16, %v1175_v0  ;;  %v2143_v34 = vld [vmem:[%s2809_s16 + $0x60] sm:$0xff]  ;;  %v2144_v36 = vld [vmem:[%s2809_s16 + $0x68] sm:$0xff] }
 0x303   : > { %2715 = vtanh.f32 %v853_v46  ;;  %v1147_v46 = vld [vmem:[%s3703_s1 + $0xf0] sm:$0xff] }
 0x304   : > { %2717 = vtanh.f32 %v847_v50  ;;  %v3404_v50 = vpack.c.bf16 %v1148_v39, %v1144_v35  ;;  %v3406_v17 = vpack.c.bf16 %v1147_v46, %v1143_v44 }
 0x305   : > { %2719 = vtanh.f32 %v858_v47  ;;  %v1154_v47 = vld [vmem:[%s3703_s1 + $0x128] sm:$0xff] }
 0x30c   : > { %v2714_v59 = vpop.eup %2713 }
 0x30d   : > { %v2716_v11 = vpop.eup %2715  ;;  %v851_v28 = vmul.f32 0.5, %v2714_v59  ;;  %v1152_v59 = vld [vmem:[%s3703_s1 + $0x118] sm:$0xff] }
 0x30e   : > { %v855_v51 = vmul.f32 0.5, %v2716_v11  ;;  %v2718_v54 = vpop.eup %2717  ;;  %v3421_v11 = vpack.c.bf16 %v1154_v47, %v1150_v33  ;;  %v2145_v47 = vld [vmem:[%s2809_s16 + $0x70] sm:$0xff] }
 0x30f   : > { %v852_v53 = vadd.f32 0.5, %v851_v28  ;;  %v2720_v4 = vpop.eup %2719  ;;  %v1156_v28 = vld [vmem:[%s3703_s1 + $0x138] sm:$0xff] }
 0x310   : > { %v856_v55 = vadd.f32 0.5, %v855_v51  ;;  %v860_v60 = vmul.f32 0.5, %v2720_v4  ;;  %v1151_v51 = vld [vmem:[%s3703_s1 + $0x110] sm:$0xff]  ;;  %v1160_v4 = vld [vmem:[%s3703_s1 + $0x158] sm:$0xff] }
 0x311   : > { %v863_v56 = vmul.f32 %v2718_v54, %v852_v53  ;;  %v1155_v53 = vld [vmem:[%s3703_s1 + $0x130] sm:$0xff]  ;;  %v3432_v54 = vpack.c.bf16 %v1156_v28, %v1152_v59 }
 0x312   : > { %v862_v42 = vmul.f32 %v856_v55, %v3189_v14  ;;  %v861_v62 = vadd.f32 0.5, %v860_v60  ;;  %v1121_v14 = vld [vmem:[%s3703_s1 + $0x20] sm:$0xff]  ;;  %v3434_v55 = vpack.c.bf16 %v1155_v53, %v1151_v51 }
 0x313   : > { %v3314_v20 = vpack.c.bf16 %v1121_v14, %v1117_v12  ;;  %v1168_v12 = vld [vmem:[%s3703_s1 + $0x198] sm:$0xff]  ;;  %v3477_v14 = vpack.c.bf16 %v1170_v6, %v1166_v3 }
 0x314   : > { %v3286_v57 = vadd.f32 %v863_v56, %v862_v42  ;;  %v1158_v56 = vld [vmem:[%s3703_s1 + $0x148] sm:$0xff]  ;;  %v3488_v10 = vpack.c.bf16 %v1172_v21, %v1168_v12 }
 0x315   : > { %v1162_v42 = vld [vmem:[%s3703_s1 + $0x168] sm:$0xff] }
 0x316   : > { %2721 = vtanh.f32 %v3286_v57  ;;  %v3449_v60 = vpack.c.bf16 %v1162_v42, %v1158_v56  ;;  %v2146_v56 = vld [vmem:[%s2809_s16 + $0x78] sm:$0xff] }
 0x320   : > { %v2722_v18 = vpop.eup %2721 }
 0x321   : > { %v866_v63 = vmul.f32 %v2722_v18, %v861_v62  ;;  %v1164_v62 = vld [vmem:[%s3703_s1 + $0x178] sm:$0xff]  ;;  %v1159_v18 = vld [vmem:[%s3703_s1 + $0x150] sm:$0xff] }
 0x322   : > { %v3460_v1 = vpack.c.bf16 %v1164_v62, %v1160_v4 }
 0x323   : > { %2142 = vst [vmem:[%s2814_s19 + $0x10] sm:$0xff] %v866_v63  ;;  %1007 = vmatmul.mubr.f32.vlgmr.msra.gmra.mrb[6].mxu0 %v866_v63  ;;  %1078 = vmatmul.mubr.f32.vlgmr.msra.gmra.mrb[6].mxu1 %v866_v63  ;;  %v1163_v63 = vld [vmem:[%s3703_s1 + $0x170] sm:$0xff] }
 0x324   : > { %1245 = vmatprep.mubr.f32.mxu0 %v2782_v8  ;;  %1316 = vmatprep.mubr.f32.mxu1 %v2782_v8  ;;  %v3462_v2 = vpack.c.bf16 %v1163_v63, %v1159_v18 }
 0x325   : > { %2430 = vmatpush1.bf16.msra.mxu0 %v3314_v20  ;;  %2462 = vmatpush1.bf16.msra.mxu1 %v3323_v24 }
 0x326   : > { %2432 = vmatprep.subr.bf16.mxu0 %v3337_v31  ;;  %2464 = vmatprep.subr.bf16.mxu1 %v3348_v37 }
 0x329   : > { %2434 = vmatpush1.bf16.msra.mxu0 %v3218_v19  ;;  %2466 = vmatpush1.bf16.msra.mxu1 %v3350_v52 }
 0x32a   : > { %2436 = vmatprep.subr.bf16.mxu0 %v3365_v41  ;;  %2468 = vmatprep.subr.bf16.mxu1 %v3376_v29 }
 0x32d   : > { %2438 = vmatpush1.bf16.msra.mxu0 %v3228_v40  ;;  %2470 = vmatpush1.bf16.msra.mxu1 %v3378_v32 }
 0x32e   : > { %2440 = vmatprep.subr.bf16.mxu0 %v3393_v38  ;;  %2472 = vmatprep.subr.bf16.mxu1 %v3404_v50 }
 0x331   : > { %2442 = vmatpush1.bf16.msra.mxu0 %v3238_v49  ;;  %2474 = vmatpush1.bf16.msra.mxu1 %v3406_v17 }
 0x332   : > { %2444 = vmatprep.subr.bf16.mxu0 %v3421_v11  ;;  %2476 = vmatprep.subr.bf16.mxu1 %v3432_v54 }
 0x335   : > { %2446 = vmatpush1.bf16.msra.mxu0 %v3248_v61  ;;  %2478 = vmatpush1.bf16.msra.mxu1 %v3434_v55 }
 0x336   : > { %2448 = vmatprep.subr.bf16.mxu0 %v3449_v60  ;;  %2480 = vmatprep.subr.bf16.mxu1 %v3460_v1 }
 0x339   : > { %2450 = vmatpush1.bf16.msra.mxu0 %v3258_v13  ;;  %2482 = vmatpush1.bf16.msra.mxu1 %v3462_v2 }
 0x33a   : > { %2452 = vmatprep.subr.bf16.mxu0 %v3477_v14  ;;  %2484 = vmatprep.subr.bf16.mxu1 %v3488_v10 }
 0x33d   : > { %2454 = vmatpush1.bf16.msra.mxu0 %v3268_v30  ;;  %2486 = vmatpush1.bf16.msra.mxu1 %v3490_v27 }
 0x33e   : > { %2456 = vmatprep.subr.bf16.mxu0 %v3505_v7  ;;  %2488 = vmatprep.subr.bf16.mxu1 %v3516_v48 }
 0x341   : > { %2458 = vmatpush1.bf16.msra.mxu0 %v3278_v43  ;;  %2490 = vmatpush1.bf16.msra.mxu1 %v3518_v25 }
 0x342   : > { %2492 = vmatprep.subr.bf16.mxu0 %v3301_v5  ;;  %2524 = vmatprep.subr.bf16.mxu1 %v3312_v15 }
 0x3f6   : > { %v1008_v35 = vpop.f32.mrb[6].mxu0  ;;  %v1079_v39 = vpop.f32.mrb[6].mxu1 }
 0x3f7   : > { %v1084_v44 = vadd.f32 %v2143_v34, %v1008_v35  ;;  %v1010_v46 = vpop.f32.mrb[7].mxu0  ;;  %v1081_v33 = vpop.f32.mrb[7].mxu1  ;;  %v1086_v53 = vadd.f32 %v2145_v47, %v1079_v39  ;;  %v2149_v34 = vld [vmem:[%s2809_s16 + $0x88] sm:$0xff] }
 0x3f8   : > { %v1085_v59 = vadd.f32 %v2144_v36, %v1010_v46  ;;  %v1087_v42 = vadd.f32 %v2146_v56, %v1081_v33  ;;  %v2150_v33 = vld [vmem:[%s2809_s16 + $0x90] sm:$0xff] }
 0x3f9   : > { %v1088_v28 = vmul.f32 0.5, %v1084_v44 }
 0x3fa   : > { %v1092_v51 = vmul.f32 0.5, %v1085_v59  ;;  %v1097_v4 = vmul.f32 0.5, %v1087_v42 }
 0x3fb   : > { %2723 = vtanh.f32 %v1088_v28 }
 0x3fc   : > { %2725 = vtanh.f32 %v1092_v51 }
 0x3fd   : > { %2727 = vtanh.f32 %v1086_v53  ;;  %v2151_v53 = vld [vmem:[%s2809_s16 + $0x98] sm:$0xff] }
 0x3fe   : > { %2729 = vtanh.f32 %v1097_v4 }
 0x405   : > { %v2724_v62 = vpop.eup %2723 }
 0x406   : > { %v2726_v18 = vpop.eup %2725  ;;  %v1090_v63 = vmul.f32 0.5, %v2724_v62 }
 0x407   : > { %v1094_v3 = vmul.f32 0.5, %v2726_v18  ;;  %v2728_v12 = vpop.eup %2727 }
 0x408   : > { %v1091_v6 = vadd.f32 0.5, %v1090_v63  ;;  %v2730_v23 = vpop.eup %2729 }
 0x409   : > { %v1095_v21 = vadd.f32 0.5, %v1094_v3  ;;  %v1099_v58 = vmul.f32 0.5, %v2730_v23 }
 0x40a   : > { %v1102_v22 = vmul.f32 %v2728_v12, %v1091_v6 }
 0x40b   : > { %v1101_v9 = vmul.f32 %v1095_v21, %v3286_v57  ;;  %v1100_v26 = vadd.f32 0.5, %v1099_v58  ;;  %v2148_v57 = vld [vmem:[%s2809_s16 + $0x80] sm:$0xff] }
 0x40d   : > { %v3531_v45 = vadd.f32 %v1102_v22, %v1101_v9 }
 0x40f   : > { %2731 = vtanh.f32 %v3531_v45 }
 0x419   : > { %v2732_v0 = vpop.eup %2731 }
 0x41a   : > { %v1105_v16 = vmul.f32 %v2732_v0, %v1100_v26 }
 0x41c   : > { %2147 = vst [vmem:[%s2814_s19 + $0x18] sm:$0xff] %v1105_v16  ;;  %1246 = vmatmul.mubr.f32.vlgmr.msra.gmra.mrb[8].mxu0 %v1105_v16  ;;  %1317 = vmatmul.mubr.f32.vlgmr.msra.gmra.mrb[8].mxu1 %v1105_v16 }
 0x41d   : > { %2494 = vmatpush1.bf16.msra.mxu0 %v3314_v20  ;;  %2526 = vmatpush1.bf16.msra.mxu1 %v3323_v24 }
 0x41e   : > { %2496 = vmatprep.subr.bf16.mxu0 %v3337_v31  ;;  %2528 = vmatprep.subr.bf16.mxu1 %v3348_v37 }
 0x41f   : > { %1484 = vmatprep.mubr.f32.mxu0 %v2782_v8  ;;  %1555 = vmatprep.mubr.f32.mxu1 %v2782_v8 }
 0x421   : > { %2498 = vmatpush1.bf16.msra.mxu0 %v3218_v19  ;;  %2530 = vmatpush1.bf16.msra.mxu1 %v3350_v52 }
 0x422   : > { %2500 = vmatprep.subr.bf16.mxu0 %v3365_v41  ;;  %2532 = vmatprep.subr.bf16.mxu1 %v3376_v29 }
 0x425   : > { %2502 = vmatpush1.bf16.msra.mxu0 %v3228_v40  ;;  %2534 = vmatpush1.bf16.msra.mxu1 %v3378_v32 }
 0x426   : > { %2504 = vmatprep.subr.bf16.mxu0 %v3393_v38  ;;  %2536 = vmatprep.subr.bf16.mxu1 %v3404_v50 }
 0x429   : > { %2506 = vmatpush1.bf16.msra.mxu0 %v3238_v49  ;;  %2538 = vmatpush1.bf16.msra.mxu1 %v3406_v17 }
 0x42a   : > { %2508 = vmatprep.subr.bf16.mxu0 %v3421_v11  ;;  %2540 = vmatprep.subr.bf16.mxu1 %v3432_v54 }
 0x42d   : > { %2510 = vmatpush1.bf16.msra.mxu0 %v3248_v61  ;;  %2542 = vmatpush1.bf16.msra.mxu1 %v3434_v55 }
 0x42e   : > { %2512 = vmatprep.subr.bf16.mxu0 %v3449_v60  ;;  %2544 = vmatprep.subr.bf16.mxu1 %v3460_v1 }
 0x431   : > { %2514 = vmatpush1.bf16.msra.mxu0 %v3258_v13  ;;  %2546 = vmatpush1.bf16.msra.mxu1 %v3462_v2 }
 0x432   : > { %2516 = vmatprep.subr.bf16.mxu0 %v3477_v14  ;;  %2548 = vmatprep.subr.bf16.mxu1 %v3488_v10 }
 0x435   : > { %2518 = vmatpush1.bf16.msra.mxu0 %v3268_v30  ;;  %2550 = vmatpush1.bf16.msra.mxu1 %v3490_v27 }
 0x436   : > { %2520 = vmatprep.subr.bf16.mxu0 %v3505_v7  ;;  %2552 = vmatprep.subr.bf16.mxu1 %v3516_v48 }
 0x439   : > { %2522 = vmatpush1.bf16.msra.mxu0 %v3278_v43  ;;  %2554 = vmatpush1.bf16.msra.mxu1 %v3518_v25 }
 0x43a   : > { %2556 = vmatprep.subr.bf16.mxu0 %v3301_v5  ;;  %2588 = vmatprep.subr.bf16.mxu1 %v3312_v15 }
 0x4ef   : > { %v1247_v36 = vpop.f32.mrb[8].mxu0  ;;  %v1318_v35 = vpop.f32.mrb[8].mxu1 }
 0x4f0   : > { %v1323_v39 = vadd.f32 %v2148_v57, %v1247_v36  ;;  %v1249_v44 = vpop.f32.mrb[9].mxu0  ;;  %v1320_v46 = vpop.f32.mrb[9].mxu1  ;;  %v1325_v51 = vadd.f32 %v2150_v33, %v1318_v35  ;;  %v2155_v57 = vld [vmem:[%s2809_s16 + $0xb0] sm:$0xff] }
 0x4f1   : > { %v1324_v47 = vadd.f32 %v2149_v34, %v1249_v44  ;;  %v1326_v56 = vadd.f32 %v2151_v53, %v1320_v46 }
 0x4f2   : > { %v1327_v59 = vmul.f32 0.5, %v1323_v39  ;;  %v2156_v39 = vld [vmem:[%s2809_s16 + $0xb8] sm:$0xff] }
 0x4f3   : > { %v1331_v28 = vmul.f32 0.5, %v1324_v47  ;;  %v1336_v42 = vmul.f32 0.5, %v1326_v56 }
 0x4f4   : > { %2733 = vtanh.f32 %v1327_v59 }
 0x4f5   : > { %2735 = vtanh.f32 %v1331_v28 }
 0x4f6   : > { %2737 = vtanh.f32 %v1325_v51 }
 0x4f7   : > { %2739 = vtanh.f32 %v1336_v42 }
 0x4fe   : > { %v2734_v4 = vpop.eup %2733 }
 0x4ff   : > { %v2736_v62 = vpop.eup %2735  ;;  %v1329_v18 = vmul.f32 0.5, %v2734_v4 }
 0x500   : > { %v1333_v63 = vmul.f32 0.5, %v2736_v62  ;;  %v2738_v6 = vpop.eup %2737 }
 0x501   : > { %v1330_v3 = vadd.f32 0.5, %v1329_v18  ;;  %v2740_v23 = vpop.eup %2739 }
 0x502   : > { %v1334_v12 = vadd.f32 0.5, %v1333_v63  ;;  %v1338_v58 = vmul.f32 0.5, %v2740_v23  ;;  %v2160_v23 = vld [vmem:[%s2809_s16 + $0xd0] sm:$0xff] }
 0x503   : > { %v1341_v21 = vmul.f32 %v2738_v6, %v1330_v3 }
 0x504   : > { %v1340_v22 = vmul.f32 %v1334_v12, %v3531_v45  ;;  %v1339_v26 = vadd.f32 0.5, %v1338_v58 }
 0x506   : > { %v3574_v9 = vadd.f32 %v1341_v21, %v1340_v22 }
 0x508   : > { %2741 = vtanh.f32 %v3574_v9 }
 0x512   : > { %v2742_v0 = vpop.eup %2741 }
 0x513   : > { %v1344_v16 = vmul.f32 %v2742_v0, %v1339_v26 }
 0x515   : > { %2152 = vst [vmem:[%s2814_s19 + $0x20] sm:$0xff] %v1344_v16  ;;  %1485 = vmatmul.mubr.f32.vlgmr.msra.gmra.mrb[10].mxu0 %v1344_v16  ;;  %1556 = vmatmul.mubr.f32.vlgmr.msra.gmra.mrb[10].mxu1 %v1344_v16  ;;  %v2161_v16 = vld [vmem:[%s2809_s16 + $0xd8] sm:$0xff] }
 0x516   : > { %2558 = vmatpush1.bf16.msra.mxu0 %v3314_v20  ;;  %2590 = vmatpush1.bf16.msra.mxu1 %v3323_v24 }
 0x517   : > { %2560 = vmatprep.subr.bf16.mxu0 %v3337_v31  ;;  %2592 = vmatprep.subr.bf16.mxu1 %v3348_v37 }
 0x518   : > { %1723 = vmatprep.mubr.f32.mxu0 %v2782_v8  ;;  %1794 = vmatprep.mubr.f32.mxu1 %v2782_v8 }
 0x51a   : > { %2562 = vmatpush1.bf16.msra.mxu0 %v3218_v19  ;;  %2594 = vmatpush1.bf16.msra.mxu1 %v3350_v52  ;;  %v2153_v19 = vld [vmem:[%s2809_s16 + $0xa0] sm:$0xff] }
 0x51b   : > { %2564 = vmatprep.subr.bf16.mxu0 %v3365_v41  ;;  %2596 = vmatprep.subr.bf16.mxu1 %v3376_v29 }
 0x51e   : > { %2566 = vmatpush1.bf16.msra.mxu0 %v3228_v40  ;;  %2598 = vmatpush1.bf16.msra.mxu1 %v3378_v32  ;;  %v2154_v40 = vld [vmem:[%s2809_s16 + $0xa8] sm:$0xff] }
 0x51f   : > { %2568 = vmatprep.subr.bf16.mxu0 %v3393_v38  ;;  %2600 = vmatprep.subr.bf16.mxu1 %v3404_v50 }
 0x522   : > { %2570 = vmatpush1.bf16.msra.mxu0 %v3238_v49  ;;  %2602 = vmatpush1.bf16.msra.mxu1 %v3406_v17 }
 0x523   : > { %2572 = vmatprep.subr.bf16.mxu0 %v3421_v11  ;;  %2604 = vmatprep.subr.bf16.mxu1 %v3432_v54 }
 0x526   : > { %2574 = vmatpush1.bf16.msra.mxu0 %v3248_v61  ;;  %2606 = vmatpush1.bf16.msra.mxu1 %v3434_v55 }
 0x527   : > { %2576 = vmatprep.subr.bf16.mxu0 %v3449_v60  ;;  %2608 = vmatprep.subr.bf16.mxu1 %v3460_v1 }
 0x52a   : > { %2578 = vmatpush1.bf16.msra.mxu0 %v3258_v13  ;;  %2610 = vmatpush1.bf16.msra.mxu1 %v3462_v2 }
 0x52b   : > { %2580 = vmatprep.subr.bf16.mxu0 %v3477_v14  ;;  %2612 = vmatprep.subr.bf16.mxu1 %v3488_v10 }
 0x52e   : > { %2582 = vmatpush1.bf16.msra.mxu0 %v3268_v30  ;;  %2614 = vmatpush1.bf16.msra.mxu1 %v3490_v27 }
 0x52f   : > { %2584 = vmatprep.subr.bf16.mxu0 %v3505_v7  ;;  %2616 = vmatprep.subr.bf16.mxu1 %v3516_v48 }
 0x532   : > { %2586 = vmatpush1.bf16.msra.mxu0 %v3278_v43  ;;  %2618 = vmatpush1.bf16.msra.mxu1 %v3518_v25 }
 0x533   : > { %2620 = vmatprep.subr.bf16.mxu0 %v3301_v5  ;;  %2652 = vmatprep.subr.bf16.mxu1 %v3312_v15 }
 0x5e8   : > { %v1486_v49 = vpop.f32.mrb[10].mxu0  ;;  %v1557_v61 = vpop.f32.mrb[10].mxu1 }
 0x5e9   : > { %v1562_v13 = vadd.f32 %v2153_v19, %v1486_v49  ;;  %v1488_v30 = vpop.f32.mrb[11].mxu0  ;;  %v1559_v45 = vpop.f32.mrb[11].mxu1  ;;  %v1564_v43 = vadd.f32 %v2155_v57, %v1557_v61 }
 0x5ea   : > { %v1563_v34 = vadd.f32 %v2154_v40, %v1488_v30  ;;  %v1565_v5 = vadd.f32 %v2156_v39, %v1559_v45 }
 0x5eb   : > { %v1566_v36 = vmul.f32 0.5, %v1562_v13 }
 0x5ec   : > { %v1570_v35 = vmul.f32 0.5, %v1563_v34  ;;  %v1575_v44 = vmul.f32 0.5, %v1565_v5 }
 0x5ed   : > { %2743 = vtanh.f32 %v1566_v36 }
 0x5ee   : > { %2745 = vtanh.f32 %v1570_v35 }
 0x5ef   : > { %2747 = vtanh.f32 %v1564_v43 }
 0x5f0   : > { %2749 = vtanh.f32 %v1575_v44 }
 0x5f7   : > { %v2744_v46 = vpop.eup %2743 }
 0x5f8   : > { %v2746_v15 = vpop.eup %2745  ;;  %v1568_v33 = vmul.f32 0.5, %v2744_v46 }
 0x5f9   : > { %v1572_v47 = vmul.f32 0.5, %v2746_v15  ;;  %v2748_v28 = vpop.eup %2747 }
 0x5fa   : > { %v1569_v59 = vadd.f32 0.5, %v1568_v33  ;;  %v2750_v4 = vpop.eup %2749  ;;  %v2163_v33 = vld [vmem:[%s2809_s16 + $0xe0] sm:$0xff] }
 0x5fb   : > { %v1573_v51 = vadd.f32 0.5, %v1572_v47  ;;  %v1577_v62 = vmul.f32 0.5, %v2750_v4  ;;  %v2164_v47 = vld [vmem:[%s2809_s16 + $0xe8] sm:$0xff] }
 0x5fc   : > { %v1580_v53 = vmul.f32 %v2748_v28, %v1569_v59 }
 0x5fd   : > { %v1579_v56 = vmul.f32 %v1573_v51, %v3574_v9  ;;  %v1578_v18 = vadd.f32 0.5, %v1577_v62 }
 0x5ff   : > { %v3617_v42 = vadd.f32 %v1580_v53, %v1579_v56 }
 0x601   : > { %2751 = vtanh.f32 %v3617_v42 }
 0x60b   : > { %v2752_v63 = vpop.eup %2751 }
 0x60c   : > { %v1583_v3 = vmul.f32 %v2752_v63, %v1578_v18 }
 0x60e   : > { %2157 = vst [vmem:[%s2814_s19 + $0x28] sm:$0xff] %v1583_v3  ;;  %1724 = vmatmul.mubr.f32.vlgmr.msra.gmra.mrb[12].mxu0 %v1583_v3  ;;  %1795 = vmatmul.mubr.f32.vlgmr.msra.gmra.mrb[12].mxu1 %v1583_v3  ;;  %v2166_v3 = vld [vmem:[%s2809_s16 + $0xf8] sm:$0xff] }
 0x60f   : > { %2622 = vmatpush1.bf16.msra.mxu0 %v3314_v20  ;;  %2654 = vmatpush1.bf16.msra.mxu1 %v3323_v24  ;;  %v1846_v20 = vld [vmem:[%s3703_s1 + $0x60] sm:$0xff] }
 0x610   : > { %2624 = vmatprep.subr.bf16.mxu0 %v3337_v31  ;;  %2656 = vmatprep.subr.bf16.mxu1 %v3348_v37  ;;  %v1850_v31 = vld [vmem:[%s3703_s1 + $0x80] sm:$0xff] }
 0x611   : > { %1962 = vmatprep.mubr.f32.mxu0 %v2782_v8  ;;  %2033 = vmatprep.mubr.f32.mxu1 %v2782_v8  ;;  %v1842_v8 = vld [vmem:[%s3703_s1 + $0x40] sm:$0xff] }
 0x612   : > { %v2625_v24 = vpack.c.bf16 %v1846_v20, %v1842_v8  ;;  %v1854_v37 = vld [vmem:[%s3703_s1 + $0xa0] sm:$0xff] }
 0x613   : > { %2658 = vmatpush1.bf16.msra.mxu1 %v3350_v52  ;;  %v2629_v52 = vpack.c.bf16 %v1854_v37, %v1850_v31 }
 0x614   : > { %2660 = vmatprep.subr.bf16.mxu1 %v3376_v29  ;;  %2626 = vmatpush1.bf16.msra.mxu0 %v2625_v24  ;;  %v1858_v29 = vld [vmem:[%s3703_s1 + $0xc0] sm:$0xff] }
 0x615   : > { %2628 = vmatprep.subr.bf16.mxu0 %v3365_v41  ;;  %v1862_v41 = vld [vmem:[%s3703_s1 + $0xe0] sm:$0xff] }
 0x617   : > { %2662 = vmatpush1.bf16.msra.mxu1 %v3378_v32  ;;  %v2633_v32 = vpack.c.bf16 %v1862_v41, %v1858_v29 }
 0x618   : > { %2664 = vmatprep.subr.bf16.mxu1 %v3404_v50  ;;  %2630 = vmatpush1.bf16.msra.mxu0 %v2629_v52  ;;  %v1866_v50 = vld [vmem:[%s3703_s1 + $0x100] sm:$0xff] }
 0x619   : > { %2632 = vmatprep.subr.bf16.mxu0 %v3393_v38  ;;  %v1870_v38 = vld [vmem:[%s3703_s1 + $0x120] sm:$0xff] }
 0x61b   : > { %2666 = vmatpush1.bf16.msra.mxu1 %v3406_v17  ;;  %v2637_v17 = vpack.c.bf16 %v1870_v38, %v1866_v50 }
 0x61c   : > { %2668 = vmatprep.subr.bf16.mxu1 %v3432_v54  ;;  %2634 = vmatpush1.bf16.msra.mxu0 %v2633_v32  ;;  %v1874_v54 = vld [vmem:[%s3703_s1 + $0x140] sm:$0xff] }
 0x61d   : > { %2636 = vmatprep.subr.bf16.mxu0 %v3421_v11  ;;  %v1878_v11 = vld [vmem:[%s3703_s1 + $0x160] sm:$0xff] }
 0x61f   : > { %2670 = vmatpush1.bf16.msra.mxu1 %v3434_v55  ;;  %v2641_v55 = vpack.c.bf16 %v1878_v11, %v1874_v54 }
 0x620   : > { %2672 = vmatprep.subr.bf16.mxu1 %v3460_v1  ;;  %2638 = vmatpush1.bf16.msra.mxu0 %v2637_v17  ;;  %v1882_v1 = vld [vmem:[%s3703_s1 + $0x180] sm:$0xff] }
 0x621   : > { %2640 = vmatprep.subr.bf16.mxu0 %v3449_v60  ;;  %v1886_v60 = vld [vmem:[%s3703_s1 + $0x1a0] sm:$0xff] }
 0x623   : > { %2674 = vmatpush1.bf16.msra.mxu1 %v3462_v2  ;;  %v2645_v2 = vpack.c.bf16 %v1886_v60, %v1882_v1 }
 0x624   : > { %2676 = vmatprep.subr.bf16.mxu1 %v3488_v10  ;;  %2642 = vmatpush1.bf16.msra.mxu0 %v2641_v55  ;;  %v1890_v10 = vld [vmem:[%s3703_s1 + $0x1c0] sm:$0xff] }
 0x625   : > { %2644 = vmatprep.subr.bf16.mxu0 %v3477_v14  ;;  %v1894_v14 = vld [vmem:[%s3703_s1 + $0x1e0] sm:$0xff] }
 0x627   : > { %2678 = vmatpush1.bf16.msra.mxu1 %v3490_v27  ;;  %v2649_v27 = vpack.c.bf16 %v1894_v14, %v1890_v10 }
 0x628   : > { %2680 = vmatprep.subr.bf16.mxu1 %v3516_v48  ;;  %2646 = vmatpush1.bf16.msra.mxu0 %v2645_v2  ;;  %v2158_v48 = vld [vmem:[%s2809_s16 + $0xc0] sm:$0xff] }
 0x629   : > { %2648 = vmatprep.subr.bf16.mxu0 %v3505_v7 }
 0x62b   : > { %2682 = vmatpush1.bf16.msra.mxu1 %v3518_v25  ;;  %v2159_v25 = vld [vmem:[%s2809_s16 + $0xc8] sm:$0xff] }
 0x62c   : > { %2650 = vmatpush1.bf16.msra.mxu0 %v2649_v27 }
 0x6e1   : > { %v1725_v6 = vpop.f32.mrb[12].mxu0  ;;  %v1796_v12 = vpop.f32.mrb[12].mxu1 }
 0x6e2   : > { %v1801_v21 = vadd.f32 %v2158_v48, %v1725_v6  ;;  %v1727_v22 = vpop.f32.mrb[13].mxu0  ;;  %v1798_v9 = vpop.f32.mrb[13].mxu1  ;;  %v1803_v0 = vadd.f32 %v2160_v23, %v1796_v12 }
 0x6e3   : > { %v1802_v7 = vadd.f32 %v2159_v25, %v1727_v22  ;;  %v1804_v19 = vadd.f32 %v2161_v16, %v1798_v9 }
 0x6e4   : > { %v1805_v58 = vmul.f32 0.5, %v1801_v21 }
 0x6e5   : > { %v1809_v26 = vmul.f32 0.5, %v1802_v7  ;;  %v1814_v40 = vmul.f32 0.5, %v1804_v19 }
 0x6e6   : > { %2753 = vtanh.f32 %v1805_v58 }
 0x6e7   : > { %2755 = vtanh.f32 %v1809_v26 }
 0x6e8   : > { %2757 = vtanh.f32 %v1803_v0 }
 0x6e9   : > { %2759 = vtanh.f32 %v1814_v40 }
 0x6f0   : > { %v2754_v49 = vpop.eup %2753 }
 0x6f1   : > { %v2756_v61 = vpop.eup %2755  ;;  %v1807_v13 = vmul.f32 0.5, %v2754_v49 }
 0x6f2   : > { %v1811_v30 = vmul.f32 0.5, %v2756_v61  ;;  %v2758_v57 = vpop.eup %2757 }
 0x6f3   : > { %v1808_v45 = vadd.f32 0.5, %v1807_v13  ;;  %v2760_v39 = vpop.eup %2759 }
 0x6f4   : > { %v1812_v34 = vadd.f32 0.5, %v1811_v30  ;;  %v1816_v5 = vmul.f32 0.5, %v2760_v39 }
 0x6f5   : > { %v1819_v36 = vmul.f32 %v2758_v57, %v1808_v45 }
 0x6f6   : > { %v1818_v35 = vmul.f32 %v1812_v34, %v3617_v42  ;;  %v1817_v44 = vadd.f32 0.5, %v1816_v5  ;;  %v2165_v42 = vld [vmem:[%s2809_s16 + $0xf0] sm:$0xff] }
 0x6f8   : > { %v1820_v43 = vadd.f32 %v1819_v36, %v1818_v35 }
 0x6fa   : > { %2761 = vtanh.f32 %v1820_v43 }
 0x704   : > { %v2762_v46 = vpop.eup %2761 }
 0x705   : > { %v1822_v15 = vmul.f32 %v2762_v46, %v1817_v44 }
 0x707   : > { %2162 = vst [vmem:[%s2814_s19 + $0x30] sm:$0xff] %v1822_v15  ;;  %1963 = vmatmul.mubr.f32.vlgmr.msra.gmra.mrb[14].mxu0 %v1822_v15  ;;  %2034 = vmatmul.mubr.f32.vlgmr.msra.gmra.mrb[14].mxu1 %v1822_v15 }
 0x7da   : > { %v1964_v59 = vpop.f32.mrb[14].mxu0  ;;  %v2035_v28 = vpop.f32.mrb[14].mxu1 }
 0x7db   : > { %v2040_v51 = vadd.f32 %v2163_v33, %v1964_v59  ;;  %v1966_v53 = vpop.f32.mrb[15].mxu0  ;;  %v2037_v56 = vpop.f32.mrb[15].mxu1  ;;  %v2042_v63 = vadd.f32 %v2165_v42, %v2035_v28 }
 0x7dc   : > { %v2041_v4 = vadd.f32 %v2164_v47, %v1966_v53  ;;  %v2043_v8 = vadd.f32 %v2166_v3, %v2037_v56 }
 0x7dd   : > { %v2044_v62 = vmul.f32 0.5, %v2040_v51 }
 0x7de   : > { %v2048_v18 = vmul.f32 0.5, %v2041_v4  ;;  %v2053_v20 = vmul.f32 0.5, %v2043_v8 }
 0x7df   : > { %2763 = vtanh.f32 %v2044_v62 }
 0x7e0   : > { %2765 = vtanh.f32 %v2048_v18 }
 0x7e1   : > { %2767 = vtanh.f32 %v2042_v63 }
 0x7e2   : > { %2769 = vtanh.f32 %v2053_v20 }
 0x7e9   : > { %v2764_v24 = vpop.eup %2763 }
 0x7ea   : > { %v2766_v31 = vpop.eup %2765  ;;  %v2046_v37 = vmul.f32 0.5, %v2764_v24 }
 0x7eb   : > { %v2050_v52 = vmul.f32 0.5, %v2766_v31  ;;  %v2768_v41 = vpop.eup %2767 }
 0x7ec   : > { %v2047_v29 = vadd.f32 0.5, %v2046_v37  ;;  %v2770_v54 = vpop.eup %2769 }
 0x7ed   : > { %v2051_v32 = vadd.f32 0.5, %v2050_v52  ;;  %v2055_v11 = vmul.f32 0.5, %v2770_v54 }
 0x7ee   : > { %v2058_v50 = vmul.f32 %v2768_v41, %v2047_v29 }
 0x7ef   : > { %v2057_v38 = vmul.f32 %v2051_v32, %v1820_v43  ;;  %v2056_v55 = vadd.f32 0.5, %v2055_v11 }
 0x7f1   : > { %v2059_v17 = vadd.f32 %v2058_v50, %v2057_v38 }
 0x7f3   : > { %2771 = vtanh.f32 %v2059_v17  ;;  %2062 = vst [vmem:[#allocation3] sm:$0xff] %v2059_v17 }
 0x7fd   : > { %v2772_v1 = vpop.eup %2771 }
 0x7fe   : > { %v2061_v60 = vmul.f32 %v2772_v1, %v2056_v55 }
 0x800   : > { %2063 = vst [vmem:[#allocation2] sm:$0xff] %v2061_v60  ;;  %2167 = vst [vmem:[%s2814_s19 + $0x38] sm:$0xff] %v2061_v60 }
 0x801 PF: > { %s12_s9 = sadd.s32 1, %s2779_s9  }
 0x802   : > { %p9_p5 = scmp.ge.s32.totalorder %s12_s9, 4  }
 0x804   :  { %11 = sbr.rel (!%p9_p5) target bundleno = 1 (0x1), region = 76 }

</bundles_post_ra>
